<compile_context>
chip_gen: v7x
topology: tpu7x:2x2x1
jax: 0.10.0
libtpu: 0.0.40
codegen_flags: <defaults>
</compile_context>

<pallas_src>
import functools
import math

import jax
import jax.numpy as jnp
from jax import lax
from jax.experimental import pallas as pl
from jax.experimental.pallas import tpu as pltpu

F32 = jnp.float32


def _vmem_spec():
    return pl.BlockSpec(memory_space=pltpu.MemorySpace.VMEM)


# ----------------------------- fused Pallas kernel -------------------------- #

def _fused_encoder_kernel(x_ref, biaspe_ref, encw_ref, wslab_ref, bslab_ref,
                          mbig_ref, maskadd_ref, out_ref, *,
                          num_layers, H, E, Hid, eps):
    """Entire EmbeddingNet forward; everything lives in VMEM/vregs.

    x_ref      : (LS, Din)          flattened input rows, r = l*S + s
    biaspe_ref : (LS, E)            enc_bias*sqrt(E) + positional encoding rows
    encw_ref   : (E, Din)           encoder weight, pre-scaled by sqrt(E)
    wslab_ref  : (num_layers*(4E+2*Hid), E)
                   per layer rows: [ qkv_w (3E, q-part pre-scaled) | out_w (E)
                                     | ffn_w1 (Hid) | ffn_w2.T (Hid) ]
    bslab_ref  : (num_layers*8, Wb) per layer rows:
                   [ b_qkv | b_out | ln1_g | ln1_b | b_ffn1 | b_ffn2 | ln2_g | ln2_b ]
    mbig_ref   : (H*LS, E)          stacked per-head column masks (0/1)
    maskadd_ref: (H*LS, LS)         stacked additive batch mask (0 / -1e30)
    out_ref    : (LS, E)
    """
    LS = x_ref.shape[0]

    def matmul_t(a, w):  # a @ w.T with f32 accumulation on the MXU
        return lax.dot_general(a, w, (((1,), (1,)), ((), ())),
                               preferred_element_type=F32)

    def layernorm(z, g, b):  # PyTorch post-norm: biased var, eps inside rsqrt
        mu = jnp.mean(z, axis=-1, keepdims=True)
        var = jnp.mean((z - mu) ** 2, axis=-1, keepdims=True)
        return (z - mu) * lax.rsqrt(var + eps) * g + b

    # ---- embedding linear (sqrt(E) folded) + bias + positional encoding ----
    y = matmul_t(x_ref[...], encw_ref[...]) + biaspe_ref[...]

    m_big = mbig_ref[...]         # (H*LS, E)
    mask_add = maskadd_ref[...]   # (H*LS, LS)

    wrows_per_layer = 4 * E + 2 * Hid

    # ------------------------------ encoder layers --------------------------- #
    for layer in range(num_layers):
        bw = layer * wrows_per_layer
        w_qkv = wslab_ref[bw:bw + 3 * E, :]                      # (3E, E)
        wo = wslab_ref[bw + 3 * E:bw + 4 * E, :]                 # (E, E)
        w1 = wslab_ref[bw + 4 * E:bw + 4 * E + Hid, :]           # (Hid, E)
        w2t = wslab_ref[bw + 4 * E + Hid:bw + 4 * E + 2 * Hid, :]  # (Hid, E)

        bblk = bslab_ref[layer * 8:(layer + 1) * 8, :]           # (8, Wb)
        b_qkv = bblk[0:1, :3 * E]
        bo = bblk[1:2, :E]
        g1 = bblk[2:3, :E]
        be1 = bblk[3:4, :E]
        b1 = bblk[4:5, :Hid]
        b2 = bblk[5:6, :E]
        g2 = bblk[6:7, :E]
        be2 = bblk[7:8, :E]

        # --- fused QKV projection: one (LS, 3E) MXU push (scale pre-folded) ---
        qkv = matmul_t(y, w_qkv) + b_qkv                          # (LS, 3E)
        q = qkv[:, :E]
        k = qkv[:, E:2 * E]
        v = qkv[:, 2 * E:3 * E]

        # --- head-stacked attention: one score matmul, one softmax, one PV ---
        # Row block h of q_big is q with only head-h columns kept, so the
        # E-wide contraction with k equals the per-head dh-wide score.
        q_big = jnp.concatenate([q] * H, axis=0) * m_big          # (H*LS, E)
        s = matmul_t(q_big, k) + mask_add                         # (H*LS, LS)
        s = s - jnp.max(s, axis=-1, keepdims=True)
        p = jnp.exp(s)
        # exact divide (approx reciprocal would eat the 1e-4 tolerance)
        p = p / jnp.sum(p, axis=-1, keepdims=True)
        # Row block h of p @ v masked to head-h columns == P_h @ V_h placed in
        # its own column group; summing blocks assembles the merged heads.
        pv = jnp.dot(p, v, preferred_element_type=F32) * m_big    # (H*LS, E)
        attn = pv[0:LS]
        for h in range(1, H):                                     # vreg-resident
            attn = attn + pv[h * LS:(h + 1) * LS]

        a = matmul_t(attn, wo) + bo
        y = layernorm(y + a, g1, be1)                             # post-norm

        # ------------------------------ feed-forward -------------------------
        hid = jnp.maximum(matmul_t(y, w1) + b1, 0.0)              # (LS, Hid)
        f = jnp.dot(hid, w2t, preferred_element_type=F32) + b2    # (LS, E)
        y = layernorm(y + f, g2, be2)

    out_ref[...] = y


# ------------------------------- forward wrapper ---------------------------- #

def _positional_encoding(L, E):
    # Even E assumed (cos branch would mismatch for odd model_dimension).
    pos = jnp.arange(L, dtype=F32)[:, None]
    norm = jnp.exp(jnp.arange(0, E, 2, dtype=F32) * (-math.log(10000.0) / E))
    pe = jnp.zeros((L, E), F32)
    pe = pe.at[:, 0::2].set(jnp.sin(pos * norm))
    pe = pe.at[:, 1::2].set(jnp.cos(pos * norm))
    return pe


def embedding_net_forward(x, params, cfg):
    S = cfg['sequence_length']
    Din = cfg['embedding_input_dimension']
    assert Din == cfg['num_assets'] * cfg['asset_dimension']
    E = cfg['model_dimension']
    H = cfg['num_heads']
    Hid = cfg['hidden_dimension']
    dh = E // H
    assert E % H == 0 and E % 8 == 0 and Hid % 8 == 0

    xr = x.reshape(-1, S, Din).astype(F32)        # (L, S, Din)  -- x.view(...)
    L = xr.shape[0]
    LS = L * S
    xf = xr.reshape(LS, Din)

    attn_scale = 1.0 / math.sqrt(dh)
    scale_e = math.sqrt(E)

    # ---- host-side constant folding / packing (all rides in a few DMAs) ----
    enc_w = (params['enc_w'] * scale_e).astype(F32)                    # (E, Din)
    pe_rows = jnp.repeat(_positional_encoding(L, E), S, axis=0)        # (LS, E)
    bias_pe = (params['enc_b'] * scale_e + pe_rows).astype(F32)        # (LS, E)

    Wb = max(3 * E, Hid)

    def pad_row(v):
        v = v.reshape(-1).astype(F32)
        return jnp.pad(v, (0, Wb - v.shape[0]))

    w_rows, b_rows = [], []
    for lyr in params['layers']:
        w_qkv = lyr['in_proj_w'].astype(F32)
        w_qkv = w_qkv.at[:E].multiply(attn_scale)        # fold 1/sqrt(dh) into q
        w_rows += [w_qkv, lyr['out_proj_w'].astype(F32),
                   lyr['ffn_w1'].astype(F32), lyr['ffn_w2'].astype(F32).T]

        b_qkv = lyr['in_proj_b'].reshape(-1).astype(F32)
        b_qkv = b_qkv.at[:E].multiply(attn_scale)
        b_rows += [pad_row(b_qkv), pad_row(lyr['out_proj_b']),
                   pad_row(lyr['ln1_w']), pad_row(lyr['ln1_b']),
                   pad_row(lyr['ffn_b1']), pad_row(lyr['ffn_b2']),
                   pad_row(lyr['ln2_w']), pad_row(lyr['ln2_b'])]

    w_slab = jnp.concatenate(w_rows, axis=0)             # (nl*(4E+2Hid), E)
    b_slab = jnp.stack(b_rows, axis=0)                   # (nl*8, Wb)

    # Batch mask: query row r=(l,s) attends key row c=(m,t) iff t == s,
    # i.e. r % S == c % S.  Additive 0 / -1e30 (diagonal always unmasked).
    rows = jnp.arange(LS)
    same_batch = (rows[:, None] % S) == (rows[None, :] % S)
    mask_add = jnp.where(same_batch, 0.0, -1e30).astype(F32)   # (LS, LS)
    mask_add_big = jnp.tile(mask_add, (H, 1))                  # (H*LS, LS)

    # Stacked per-head column masks over the E dim.
    head_of_col = jnp.arange(E) // dh
    h_idx = jnp.repeat(jnp.arange(H), LS)
    m_big = (head_of_col[None, :] == h_idx[:, None]).astype(F32)  # (H*LS, E)

    inputs = [xf, bias_pe, enc_w, w_slab, b_slab, m_big, mask_add_big]

    num_layers = len(params['layers'])
    flops = (2 * LS * Din * E
             + num_layers * (2 * LS * E * 3 * E           # fused QKV
                             + 2 * H * LS * LS * E        # scores
                             + 2 * H * LS * LS * E        # PV
                             + 2 * LS * E * E             # output proj
                             + 4 * LS * E * Hid))         # FFN
    transcendentals = num_layers * (H * LS * LS + 4 * LS)
    bytes_accessed = sum(int(a.size) * 4 for a in inputs) + LS * E * 4

    kernel = functools.partial(
        _fused_encoder_kernel, num_layers=num_layers,
        H=H, E=E, Hid=Hid, eps=1e-5)

    y = pl.pallas_call(
        kernel,
        out_shape=jax.ShapeDtypeStruct((LS, E), F32),
        in_specs=[_vmem_spec() for _ in inputs],
        out_specs=_vmem_spec(),
        cost_estimate=pl.CostEstimate(flops=flops,
                                      transcendentals=transcendentals,
                                      bytes_accessed=bytes_accessed),
    )(*inputs)
    return y.reshape(L, S, E)


# ------------------------------ reference (jnp) ----------------------------- #

def _ln_ref(z, g, b, eps=1e-5):
    m = z.mean(-1, keepdims=True)
    v = ((z - m) ** 2).mean(-1, keepdims=True)
    return (z - m) * lax.rsqrt(v + eps) * g + b


def reference_forward(x, params, cfg):
    S = cfg['sequence_length']
    Din = cfg['embedding_input_dimension']
    E = cfg['model_dimension']
    H = cfg['num_heads']
    dh = E // H
    xr = x.reshape(-1, S, Din).astype(F32)
    L = xr.shape[0]
    pe = _positional_encoding(L, E)
    y = (xr @ params['enc_w'].T + params['enc_b'][0]) * math.sqrt(E) + pe[:, None, :]
    y = y.reshape(L * S, E)
    for lyr in params['layers']:
        qkv = y @ lyr['in_proj_w'].T + lyr['in_proj_b'][0]
        q, k, v = jnp.split(qkv, 3, axis=-1)

        def heads(t):
            return t.reshape(L, S, H, dh).transpose(1, 2, 0, 3)   # (S,H,L,dh)

        q, k, v = heads(q), heads(k), heads(v)
        s = jnp.einsum('shld,shmd->shlm', q, k) / math.sqrt(dh)
        p = jax.nn.softmax(s, axis=-1)
        a = jnp.einsum('shlm,shmd->shld', p, v)
        a = a.transpose(2, 0, 1, 3).reshape(L * S, E)
        a = a @ lyr['out_proj_w'].T + lyr['out_proj_b'][0]
        y = _ln_ref(y + a, lyr['ln1_w'][0], lyr['ln1_b'][0])
        f = jnp.maximum(y @ lyr['ffn_w1'].T + lyr['ffn_b1'][0], 0.0)
        f = f @ lyr['ffn_w2'].T + lyr['ffn_b2'][0]
        y = _ln_ref(y + f, lyr['ln2_w'][0], lyr['ln2_b'][0])
    return y.reshape(L, S, E)


# --------------------------------- parameters -------------------------------- #

def init_params(key, cfg):
    E = cfg['model_dimension']
    Din = cfg['embedding_input_dimension']
    Hid = cfg['hidden_dimension']
    n_layers = cfg['num_layers']
    keys = jax.random.split(key, 2 + 6 * n_layers)

    params = {
        # encoder.weight.data.uniform_(-0.1, 0.1)  (deterministic synthetic init)
        'enc_w': jax.random.uniform(keys[0], (E, Din), F32, -0.1, 0.1),
        'enc_b': jax.random.uniform(keys[1], (1, E), F32, -0.05, 0.05),
        'layers': [],
    }
    ki = 2
    for _ in range(n_layers):
        lyr = {
            'in_proj_w': 0.08 * jax.random.normal(keys[ki + 0], (3 * E, E), F32),
            'in_proj_b': 0.02 * jax.random.normal(keys[ki + 1], (1, 3 * E), F32),
            'out_proj_w': 0.08 * jax.random.normal(keys[ki + 2], (E, E), F32),
            'out_proj_b': 0.02 * jax.random.normal(keys[ki + 3], (1, E), F32),
            'ffn_w1': 0.08 * jax.random.normal(keys[ki + 4], (Hid, E), F32),
            'ffn_b1': jnp.zeros((1, Hid), F32),
            'ffn_w2': 0.08 * jax.random.normal(keys[ki + 5], (E, Hid), F32),
            'ffn_b2': jnp.zeros((1, E), F32),
            'ln1_w': jnp.ones((1, E), F32), 'ln1_b': jnp.zeros((1, E), F32),
            'ln2_w': jnp.ones((1, E), F32), 'ln2_b': jnp.zeros((1, E), F32),
        }
        ki += 6
        params['layers'].append(lyr)
    return params


# ------------------------------------ main ----------------------------------- #

if __name__ == "__main__":
    cfg = dict(
        sequence_length=8,
        asset_dimension=8,
        num_assets=4,
        embedding_input_dimension=32,   # = num_assets * asset_dimension
        model_dimension=32,
        num_heads=4,
        hidden_dimension=16,
        num_layers=2,
        dropout_rate=0.0,
    )

    key = jax.random.PRNGKey(0)
    kx, kp = jax.random.split(key)
    # input: (batch=4, seq=8, assets=4, asset_dim=8) -> viewed to (4, 8, 32)
    x = jax.random.normal(
        kx, (4, cfg['sequence_length'], cfg['num_assets'], cfg['asset_dimension']),
        dtype=F32)
    params = init_params(kp, cfg)

    fwd = jax.jit(functools.partial(embedding_net_forward, cfg=cfg))
    out = jax.block_until_ready(fwd(x, params))

    ref = reference_forward(x, params, cfg)
    assert out.shape == (4, cfg['sequence_length'], cfg['model_dimension'])
    assert jnp.allclose(out, ref, atol=1e-4, rtol=1e-4), \
        float(jnp.max(jnp.abs(out - ref)))

    print("KERNEL_OK")
</pallas_src>

<mosaic_0001>
module attributes {stable_mosaic.version = 11 : i64} {
  func.func @_fused_encoder_kernel(%arg0: memref<32x32xf32, #tpu.memory_space<vmem>>, %arg1: memref<32x32xf32, #tpu.memory_space<vmem>>, %arg2: memref<32x32xf32, #tpu.memory_space<vmem>>, %arg3: memref<320x32xf32, #tpu.memory_space<vmem>>, %arg4: memref<16x96xf32, #tpu.memory_space<vmem>>, %arg5: memref<128x32xf32, #tpu.memory_space<vmem>>, %arg6: memref<128x32xf32, #tpu.memory_space<vmem>>, %arg7: memref<32x32xf32, #tpu.memory_space<vmem>>) attributes {dimension_semantics = [], scalar_prefetch = 0 : i64, scratch_operands = 0 : i64, tpu.core_type = #tpu.core_type<tc>} {
    %c0 = arith.constant 0 : index
    %c0_0 = arith.constant 0 : index
    %0 = vector.load %arg0[%c0, %c0_0] : memref<32x32xf32, #tpu.memory_space<vmem>>, vector<32x32xf32>
    %c0_1 = arith.constant 0 : index
    %c0_2 = arith.constant 0 : index
    %1 = vector.load %arg2[%c0_1, %c0_2] : memref<32x32xf32, #tpu.memory_space<vmem>>, vector<32x32xf32>
    %cst = arith.constant dense<0.000000e+00> : vector<32x32xf32>
    %2 = tpu.matmul %0, %1, %cst {dimension_numbers = #tpu.dot_dimension_numbers<[1], [1], [0], [0], [0, 0, 1, 0], [], []>} : vector<32x32xf32>, vector<32x32xf32>, vector<32x32xf32> -> vector<32x32xf32>
    %c0_3 = arith.constant 0 : index
    %c0_4 = arith.constant 0 : index
    %3 = vector.load %arg1[%c0_3, %c0_4] : memref<32x32xf32, #tpu.memory_space<vmem>>, vector<32x32xf32>
    %4 = arith.addf %2, %3 : vector<32x32xf32>
    %c0_5 = arith.constant 0 : index
    %c0_6 = arith.constant 0 : index
    %5 = vector.load %arg5[%c0_5, %c0_6] : memref<128x32xf32, #tpu.memory_space<vmem>>, vector<128x32xf32>
    %c0_7 = arith.constant 0 : index
    %c0_8 = arith.constant 0 : index
    %6 = vector.load %arg6[%c0_7, %c0_8] : memref<128x32xf32, #tpu.memory_space<vmem>>, vector<128x32xf32>
    %c0_9 = arith.constant 0 : index
    %c0_10 = arith.constant 0 : index
    %7 = vector.load %arg3[%c0_9, %c0_10] : memref<320x32xf32, #tpu.memory_space<vmem>>, vector<96x32xf32>
    %c96 = arith.constant 96 : index
    %c0_11 = arith.constant 0 : index
    %8 = vector.load %arg3[%c96, %c0_11] : memref<320x32xf32, #tpu.memory_space<vmem>>, vector<32x32xf32>
    %c128 = arith.constant 128 : index
    %c0_12 = arith.constant 0 : index
    %9 = vector.load %arg3[%c128, %c0_12] : memref<320x32xf32, #tpu.memory_space<vmem>>, vector<16x32xf32>
    %c144 = arith.constant 144 : index
    %c0_13 = arith.constant 0 : index
    %10 = vector.load %arg3[%c144, %c0_13] : memref<320x32xf32, #tpu.memory_space<vmem>>, vector<16x32xf32>
    %c0_14 = arith.constant 0 : index
    %c0_15 = arith.constant 0 : index
    %11 = vector.load %arg4[%c0_14, %c0_15] : memref<16x96xf32, #tpu.memory_space<vmem>>, vector<8x96xf32>
    %12 = vector.extract_strided_slice %11 {offsets = [0, 0], sizes = [1, 96], strides = [1, 1]} : vector<8x96xf32> to vector<1x96xf32>
    %13 = vector.extract_strided_slice %11 {offsets = [1, 0], sizes = [1, 32], strides = [1, 1]} : vector<8x96xf32> to vector<1x32xf32>
    %14 = vector.extract_strided_slice %11 {offsets = [2, 0], sizes = [1, 32], strides = [1, 1]} : vector<8x96xf32> to vector<1x32xf32>
    %15 = vector.extract_strided_slice %11 {offsets = [3, 0], sizes = [1, 32], strides = [1, 1]} : vector<8x96xf32> to vector<1x32xf32>
    %16 = vector.extract_strided_slice %11 {offsets = [4, 0], sizes = [1, 16], strides = [1, 1]} : vector<8x96xf32> to vector<1x16xf32>
    %17 = vector.extract_strided_slice %11 {offsets = [5, 0], sizes = [1, 32], strides = [1, 1]} : vector<8x96xf32> to vector<1x32xf32>
    %18 = vector.extract_strided_slice %11 {offsets = [6, 0], sizes = [1, 32], strides = [1, 1]} : vector<8x96xf32> to vector<1x32xf32>
    %19 = vector.extract_strided_slice %11 {offsets = [7, 0], sizes = [1, 32], strides = [1, 1]} : vector<8x96xf32> to vector<1x32xf32>
    %cst_16 = arith.constant dense<0.000000e+00> : vector<32x96xf32>
    %20 = tpu.matmul %4, %7, %cst_16 {dimension_numbers = #tpu.dot_dimension_numbers<[1], [1], [0], [0], [0, 0, 1, 0], [], []>} : vector<32x32xf32>, vector<96x32xf32>, vector<32x96xf32> -> vector<32x96xf32>
    %21 = vector.broadcast %12 : vector<1x96xf32> to vector<32x96xf32>
    %22 = arith.addf %20, %21 : vector<32x96xf32>
    %23 = vector.extract_strided_slice %22 {offsets = [0, 0], sizes = [32, 32], strides = [1, 1]} : vector<32x96xf32> to vector<32x32xf32>
    %24 = vector.extract_strided_slice %22 {offsets = [0, 32], sizes = [32, 32], strides = [1, 1]} : vector<32x96xf32> to vector<32x32xf32>
    %25 = vector.extract_strided_slice %22 {offsets = [0, 64], sizes = [32, 32], strides = [1, 1]} : vector<32x96xf32> to vector<32x32xf32>
    %26 = tpu.concatenate %23, %23, %23, %23 in 0 : vector<32x32xf32>, vector<32x32xf32>, vector<32x32xf32>, vector<32x32xf32> -> vector<128x32xf32>
    %27 = arith.mulf %26, %5 : vector<128x32xf32>
    %cst_17 = arith.constant dense<0.000000e+00> : vector<128x32xf32>
    %28 = tpu.matmul %27, %24, %cst_17 {dimension_numbers = #tpu.dot_dimension_numbers<[1], [1], [0], [0], [0, 0, 1, 0], [], []>} : vector<128x32xf32>, vector<32x32xf32>, vector<128x32xf32> -> vector<128x32xf32>
    %29 = arith.addf %28, %6 : vector<128x32xf32>
    %cst_18 = arith.constant dense<0xFF800000> : vector<128xf32>
    %30 = vector.multi_reduction <maximumf>, %29, %cst_18 [1] : vector<128x32xf32> to vector<128xf32>
    %31 = vector.shape_cast %30 : vector<128xf32> to vector<128x1xf32>
    %32 = vector.broadcast %31 : vector<128x1xf32> to vector<128x32xf32>
    %33 = arith.subf %29, %32 : vector<128x32xf32>
    %34 = math.exp %33 : vector<128x32xf32>
    %cst_19 = arith.constant dense<0.000000e+00> : vector<128xf32>
    %35 = vector.multi_reduction <add>, %34, %cst_19 [1] : vector<128x32xf32> to vector<128xf32>
    %36 = vector.shape_cast %35 : vector<128xf32> to vector<128x1xf32>
    %37 = vector.broadcast %36 : vector<128x1xf32> to vector<128x32xf32>
    %38 = arith.divf %34, %37 : vector<128x32xf32>
    %cst_20 = arith.constant dense<0.000000e+00> : vector<128x32xf32>
    %39 = tpu.matmul %38, %25, %cst_20 {dimension_numbers = #tpu.dot_dimension_numbers<[1], [0], [0], [1], [0, 0, 1, 1], [], []>} : vector<128x32xf32>, vector<32x32xf32>, vector<128x32xf32> -> vector<128x32xf32>
    %40 = arith.mulf %39, %5 : vector<128x32xf32>
    %41 = vector.extract_strided_slice %40 {offsets = [0, 0], sizes = [32, 32], strides = [1, 1]} : vector<128x32xf32> to vector<32x32xf32>
    %42 = vector.extract_strided_slice %40 {offsets = [32, 0], sizes = [32, 32], strides = [1, 1]} : vector<128x32xf32> to vector<32x32xf32>
    %43 = arith.addf %41, %42 : vector<32x32xf32>
    %44 = vector.extract_strided_slice %40 {offsets = [64, 0], sizes = [32, 32], strides = [1, 1]} : vector<128x32xf32> to vector<32x32xf32>
    %45 = arith.addf %43, %44 : vector<32x32xf32>
    %46 = vector.extract_strided_slice %40 {offsets = [96, 0], sizes = [32, 32], strides = [1, 1]} : vector<128x32xf32> to vector<32x32xf32>
    %47 = arith.addf %45, %46 : vector<32x32xf32>
    %cst_21 = arith.constant dense<0.000000e+00> : vector<32x32xf32>
    %48 = tpu.matmul %47, %8, %cst_21 {dimension_numbers = #tpu.dot_dimension_numbers<[1], [1], [0], [0], [0, 0, 1, 0], [], []>} : vector<32x32xf32>, vector<32x32xf32>, vector<32x32xf32> -> vector<32x32xf32>
    %49 = vector.broadcast %13 : vector<1x32xf32> to vector<32x32xf32>
    %50 = arith.addf %48, %49 : vector<32x32xf32>
    %51 = arith.addf %4, %50 : vector<32x32xf32>
    %cst_22 = arith.constant dense<0.000000e+00> : vector<32xf32>
    %52 = vector.multi_reduction <add>, %51, %cst_22 [1] : vector<32x32xf32> to vector<32xf32>
    %53 = vector.shape_cast %52 : vector<32xf32> to vector<32x1xf32>
    %cst_23 = arith.constant 3.200000e+01 : f32
    %54 = vector.broadcast %cst_23 : f32 to vector<32x1xf32>
    %55 = arith.divf %53, %54 : vector<32x1xf32>
    %56 = vector.broadcast %55 : vector<32x1xf32> to vector<32x32xf32>
    %57 = arith.subf %51, %56 : vector<32x32xf32>
    %58 = arith.mulf %57, %57 : vector<32x32xf32>
    %cst_24 = arith.constant dense<0.000000e+00> : vector<32xf32>
    %59 = vector.multi_reduction <add>, %58, %cst_24 [1] : vector<32x32xf32> to vector<32xf32>
    %60 = vector.shape_cast %59 : vector<32xf32> to vector<32x1xf32>
    %cst_25 = arith.constant 3.200000e+01 : f32
    %61 = vector.broadcast %cst_25 : f32 to vector<32x1xf32>
    %62 = arith.divf %60, %61 : vector<32x1xf32>
    %63 = vector.broadcast %55 : vector<32x1xf32> to vector<32x32xf32>
    %64 = arith.subf %51, %63 : vector<32x32xf32>
    %cst_26 = arith.constant 9.99999974E-6 : f32
    %65 = vector.broadcast %cst_26 : f32 to vector<32x1xf32>
    %66 = arith.addf %62, %65 : vector<32x1xf32>
    %67 = math.rsqrt %66 : vector<32x1xf32>
    %68 = vector.broadcast %67 : vector<32x1xf32> to vector<32x32xf32>
    %69 = arith.mulf %64, %68 : vector<32x32xf32>
    %70 = vector.broadcast %14 : vector<1x32xf32> to vector<32x32xf32>
    %71 = arith.mulf %69, %70 : vector<32x32xf32>
    %72 = vector.broadcast %15 : vector<1x32xf32> to vector<32x32xf32>
    %73 = arith.addf %71, %72 : vector<32x32xf32>
    %cst_27 = arith.constant dense<0.000000e+00> : vector<32x16xf32>
    %74 = tpu.matmul %73, %9, %cst_27 {dimension_numbers = #tpu.dot_dimension_numbers<[1], [1], [0], [0], [0, 0, 1, 0], [], []>} : vector<32x32xf32>, vector<16x32xf32>, vector<32x16xf32> -> vector<32x16xf32>
    %75 = vector.broadcast %16 : vector<1x16xf32> to vector<32x16xf32>
    %76 = arith.addf %74, %75 : vector<32x16xf32>
    %cst_28 = arith.constant 0.000000e+00 : f32
    %77 = vector.broadcast %cst_28 : f32 to vector<32x16xf32>
    %78 = arith.maximumf %76, %77 : vector<32x16xf32>
    %cst_29 = arith.constant dense<0.000000e+00> : vector<32x32xf32>
    %79 = tpu.matmul %78, %10, %cst_29 {dimension_numbers = #tpu.dot_dimension_numbers<[1], [0], [0], [1], [0, 0, 1, 1], [], []>} : vector<32x16xf32>, vector<16x32xf32>, vector<32x32xf32> -> vector<32x32xf32>
    %80 = vector.broadcast %17 : vector<1x32xf32> to vector<32x32xf32>
    %81 = arith.addf %79, %80 : vector<32x32xf32>
    %82 = arith.addf %73, %81 : vector<32x32xf32>
    %cst_30 = arith.constant dense<0.000000e+00> : vector<32xf32>
    %83 = vector.multi_reduction <add>, %82, %cst_30 [1] : vector<32x32xf32> to vector<32xf32>
    %84 = vector.shape_cast %83 : vector<32xf32> to vector<32x1xf32>
    %cst_31 = arith.constant 3.200000e+01 : f32
    %85 = vector.broadcast %cst_31 : f32 to vector<32x1xf32>
    %86 = arith.divf %84, %85 : vector<32x1xf32>
    %87 = vector.broadcast %86 : vector<32x1xf32> to vector<32x32xf32>
    %88 = arith.subf %82, %87 : vector<32x32xf32>
    %89 = arith.mulf %88, %88 : vector<32x32xf32>
    %cst_32 = arith.constant dense<0.000000e+00> : vector<32xf32>
    %90 = vector.multi_reduction <add>, %89, %cst_32 [1] : vector<32x32xf32> to vector<32xf32>
    %91 = vector.shape_cast %90 : vector<32xf32> to vector<32x1xf32>
    %cst_33 = arith.constant 3.200000e+01 : f32
    %92 = vector.broadcast %cst_33 : f32 to vector<32x1xf32>
    %93 = arith.divf %91, %92 : vector<32x1xf32>
    %94 = vector.broadcast %86 : vector<32x1xf32> to vector<32x32xf32>
    %95 = arith.subf %82, %94 : vector<32x32xf32>
    %cst_34 = arith.constant 9.99999974E-6 : f32
    %96 = vector.broadcast %cst_34 : f32 to vector<32x1xf32>
    %97 = arith.addf %93, %96 : vector<32x1xf32>
    %98 = math.rsqrt %97 : vector<32x1xf32>
    %99 = vector.broadcast %98 : vector<32x1xf32> to vector<32x32xf32>
    %100 = arith.mulf %95, %99 : vector<32x32xf32>
    %101 = vector.broadcast %18 : vector<1x32xf32> to vector<32x32xf32>
    %102 = arith.mulf %100, %101 : vector<32x32xf32>
    %103 = vector.broadcast %19 : vector<1x32xf32> to vector<32x32xf32>
    %104 = arith.addf %102, %103 : vector<32x32xf32>
    %c160 = arith.constant 160 : index
    %c0_35 = arith.constant 0 : index
    %105 = vector.load %arg3[%c160, %c0_35] : memref<320x32xf32, #tpu.memory_space<vmem>>, vector<96x32xf32>
    %c256 = arith.constant 256 : index
    %c0_36 = arith.constant 0 : index
    %106 = vector.load %arg3[%c256, %c0_36] : memref<320x32xf32, #tpu.memory_space<vmem>>, vector<32x32xf32>
    %c288 = arith.constant 288 : index
    %c0_37 = arith.constant 0 : index
    %107 = vector.load %arg3[%c288, %c0_37] : memref<320x32xf32, #tpu.memory_space<vmem>>, vector<16x32xf32>
    %c304 = arith.constant 304 : index
    %c0_38 = arith.constant 0 : index
    %108 = vector.load %arg3[%c304, %c0_38] : memref<320x32xf32, #tpu.memory_space<vmem>>, vector<16x32xf32>
    %c8 = arith.constant 8 : index
    %c0_39 = arith.constant 0 : index
    %109 = vector.load %arg4[%c8, %c0_39] : memref<16x96xf32, #tpu.memory_space<vmem>>, vector<8x96xf32>
    %110 = vector.extract_strided_slice %109 {offsets = [0, 0], sizes = [1, 96], strides = [1, 1]} : vector<8x96xf32> to vector<1x96xf32>
    %111 = vector.extract_strided_slice %109 {offsets = [1, 0], sizes = [1, 32], strides = [1, 1]} : vector<8x96xf32> to vector<1x32xf32>
    %112 = vector.extract_strided_slice %109 {offsets = [2, 0], sizes = [1, 32], strides = [1, 1]} : vector<8x96xf32> to vector<1x32xf32>
    %113 = vector.extract_strided_slice %109 {offsets = [3, 0], sizes = [1, 32], strides = [1, 1]} : vector<8x96xf32> to vector<1x32xf32>
    %114 = vector.extract_strided_slice %109 {offsets = [4, 0], sizes = [1, 16], strides = [1, 1]} : vector<8x96xf32> to vector<1x16xf32>
    %115 = vector.extract_strided_slice %109 {offsets = [5, 0], sizes = [1, 32], strides = [1, 1]} : vector<8x96xf32> to vector<1x32xf32>
    %116 = vector.extract_strided_slice %109 {offsets = [6, 0], sizes = [1, 32], strides = [1, 1]} : vector<8x96xf32> to vector<1x32xf32>
    %117 = vector.extract_strided_slice %109 {offsets = [7, 0], sizes = [1, 32], strides = [1, 1]} : vector<8x96xf32> to vector<1x32xf32>
    %cst_40 = arith.constant dense<0.000000e+00> : vector<32x96xf32>
    %118 = tpu.matmul %104, %105, %cst_40 {dimension_numbers = #tpu.dot_dimension_numbers<[1], [1], [0], [0], [0, 0, 1, 0], [], []>} : vector<32x32xf32>, vector<96x32xf32>, vector<32x96xf32> -> vector<32x96xf32>
    %119 = vector.broadcast %110 : vector<1x96xf32> to vector<32x96xf32>
    %120 = arith.addf %118, %119 : vector<32x96xf32>
    %121 = vector.extract_strided_slice %120 {offsets = [0, 0], sizes = [32, 32], strides = [1, 1]} : vector<32x96xf32> to vector<32x32xf32>
    %122 = vector.extract_strided_slice %120 {offsets = [0, 32], sizes = [32, 32], strides = [1, 1]} : vector<32x96xf32> to vector<32x32xf32>
    %123 = vector.extract_strided_slice %120 {offsets = [0, 64], sizes = [32, 32], strides = [1, 1]} : vector<32x96xf32> to vector<32x32xf32>
    %124 = tpu.concatenate %121, %121, %121, %121 in 0 : vector<32x32xf32>, vector<32x32xf32>, vector<32x32xf32>, vector<32x32xf32> -> vector<128x32xf32>
    %125 = arith.mulf %124, %5 : vector<128x32xf32>
    %cst_41 = arith.constant dense<0.000000e+00> : vector<128x32xf32>
    %126 = tpu.matmul %125, %122, %cst_41 {dimension_numbers = #tpu.dot_dimension_numbers<[1], [1], [0], [0], [0, 0, 1, 0], [], []>} : vector<128x32xf32>, vector<32x32xf32>, vector<128x32xf32> -> vector<128x32xf32>
    %127 = arith.addf %126, %6 : vector<128x32xf32>
    %cst_42 = arith.constant dense<0xFF800000> : vector<128xf32>
    %128 = vector.multi_reduction <maximumf>, %127, %cst_42 [1] : vector<128x32xf32> to vector<128xf32>
    %129 = vector.shape_cast %128 : vector<128xf32> to vector<128x1xf32>
    %130 = vector.broadcast %129 : vector<128x1xf32> to vector<128x32xf32>
    %131 = arith.subf %127, %130 : vector<128x32xf32>
    %132 = math.exp %131 : vector<128x32xf32>
    %cst_43 = arith.constant dense<0.000000e+00> : vector<128xf32>
    %133 = vector.multi_reduction <add>, %132, %cst_43 [1] : vector<128x32xf32> to vector<128xf32>
    %134 = vector.shape_cast %133 : vector<128xf32> to vector<128x1xf32>
    %135 = vector.broadcast %134 : vector<128x1xf32> to vector<128x32xf32>
    %136 = arith.divf %132, %135 : vector<128x32xf32>
    %cst_44 = arith.constant dense<0.000000e+00> : vector<128x32xf32>
    %137 = tpu.matmul %136, %123, %cst_44 {dimension_numbers = #tpu.dot_dimension_numbers<[1], [0], [0], [1], [0, 0, 1, 1], [], []>} : vector<128x32xf32>, vector<32x32xf32>, vector<128x32xf32> -> vector<128x32xf32>
    %138 = arith.mulf %137, %5 : vector<128x32xf32>
    %139 = vector.extract_strided_slice %138 {offsets = [0, 0], sizes = [32, 32], strides = [1, 1]} : vector<128x32xf32> to vector<32x32xf32>
    %140 = vector.extract_strided_slice %138 {offsets = [32, 0], sizes = [32, 32], strides = [1, 1]} : vector<128x32xf32> to vector<32x32xf32>
    %141 = arith.addf %139, %140 : vector<32x32xf32>
    %142 = vector.extract_strided_slice %138 {offsets = [64, 0], sizes = [32, 32], strides = [1, 1]} : vector<128x32xf32> to vector<32x32xf32>
    %143 = arith.addf %141, %142 : vector<32x32xf32>
    %144 = vector.extract_strided_slice %138 {offsets = [96, 0], sizes = [32, 32], strides = [1, 1]} : vector<128x32xf32> to vector<32x32xf32>
    %145 = arith.addf %143, %144 : vector<32x32xf32>
    %cst_45 = arith.constant dense<0.000000e+00> : vector<32x32xf32>
    %146 = tpu.matmul %145, %106, %cst_45 {dimension_numbers = #tpu.dot_dimension_numbers<[1], [1], [0], [0], [0, 0, 1, 0], [], []>} : vector<32x32xf32>, vector<32x32xf32>, vector<32x32xf32> -> vector<32x32xf32>
    %147 = vector.broadcast %111 : vector<1x32xf32> to vector<32x32xf32>
    %148 = arith.addf %146, %147 : vector<32x32xf32>
    %149 = arith.addf %104, %148 : vector<32x32xf32>
    %cst_46 = arith.constant dense<0.000000e+00> : vector<32xf32>
    %150 = vector.multi_reduction <add>, %149, %cst_46 [1] : vector<32x32xf32> to vector<32xf32>
    %151 = vector.shape_cast %150 : vector<32xf32> to vector<32x1xf32>
    %cst_47 = arith.constant 3.200000e+01 : f32
    %152 = vector.broadcast %cst_47 : f32 to vector<32x1xf32>
    %153 = arith.divf %151, %152 : vector<32x1xf32>
    %154 = vector.broadcast %153 : vector<32x1xf32> to vector<32x32xf32>
    %155 = arith.subf %149, %154 : vector<32x32xf32>
    %156 = arith.mulf %155, %155 : vector<32x32xf32>
    %cst_48 = arith.constant dense<0.000000e+00> : vector<32xf32>
    %157 = vector.multi_reduction <add>, %156, %cst_48 [1] : vector<32x32xf32> to vector<32xf32>
    %158 = vector.shape_cast %157 : vector<32xf32> to vector<32x1xf32>
    %cst_49 = arith.constant 3.200000e+01 : f32
    %159 = vector.broadcast %cst_49 : f32 to vector<32x1xf32>
    %160 = arith.divf %158, %159 : vector<32x1xf32>
    %161 = vector.broadcast %153 : vector<32x1xf32> to vector<32x32xf32>
    %162 = arith.subf %149, %161 : vector<32x32xf32>
    %cst_50 = arith.constant 9.99999974E-6 : f32
    %163 = vector.broadcast %cst_50 : f32 to vector<32x1xf32>
    %164 = arith.addf %160, %163 : vector<32x1xf32>
    %165 = math.rsqrt %164 : vector<32x1xf32>
    %166 = vector.broadcast %165 : vector<32x1xf32> to vector<32x32xf32>
    %167 = arith.mulf %162, %166 : vector<32x32xf32>
    %168 = vector.broadcast %112 : vector<1x32xf32> to vector<32x32xf32>
    %169 = arith.mulf %167, %168 : vector<32x32xf32>
    %170 = vector.broadcast %113 : vector<1x32xf32> to vector<32x32xf32>
    %171 = arith.addf %169, %170 : vector<32x32xf32>
    %cst_51 = arith.constant dense<0.000000e+00> : vector<32x16xf32>
    %172 = tpu.matmul %171, %107, %cst_51 {dimension_numbers = #tpu.dot_dimension_numbers<[1], [1], [0], [0], [0, 0, 1, 0], [], []>} : vector<32x32xf32>, vector<16x32xf32>, vector<32x16xf32> -> vector<32x16xf32>
    %173 = vector.broadcast %114 : vector<1x16xf32> to vector<32x16xf32>
    %174 = arith.addf %172, %173 : vector<32x16xf32>
    %cst_52 = arith.constant 0.000000e+00 : f32
    %175 = vector.broadcast %cst_52 : f32 to vector<32x16xf32>
    %176 = arith.maximumf %174, %175 : vector<32x16xf32>
    %cst_53 = arith.constant dense<0.000000e+00> : vector<32x32xf32>
    %177 = tpu.matmul %176, %108, %cst_53 {dimension_numbers = #tpu.dot_dimension_numbers<[1], [0], [0], [1], [0, 0, 1, 1], [], []>} : vector<32x16xf32>, vector<16x32xf32>, vector<32x32xf32> -> vector<32x32xf32>
    %178 = vector.broadcast %115 : vector<1x32xf32> to vector<32x32xf32>
    %179 = arith.addf %177, %178 : vector<32x32xf32>
    %180 = arith.addf %171, %179 : vector<32x32xf32>
    %cst_54 = arith.constant dense<0.000000e+00> : vector<32xf32>
    %181 = vector.multi_reduction <add>, %180, %cst_54 [1] : vector<32x32xf32> to vector<32xf32>
    %182 = vector.shape_cast %181 : vector<32xf32> to vector<32x1xf32>
    %cst_55 = arith.constant 3.200000e+01 : f32
    %183 = vector.broadcast %cst_55 : f32 to vector<32x1xf32>
    %184 = arith.divf %182, %183 : vector<32x1xf32>
    %185 = vector.broadcast %184 : vector<32x1xf32> to vector<32x32xf32>
    %186 = arith.subf %180, %185 : vector<32x32xf32>
    %187 = arith.mulf %186, %186 : vector<32x32xf32>
    %cst_56 = arith.constant dense<0.000000e+00> : vector<32xf32>
    %188 = vector.multi_reduction <add>, %187, %cst_56 [1] : vector<32x32xf32> to vector<32xf32>
    %189 = vector.shape_cast %188 : vector<32xf32> to vector<32x1xf32>
    %cst_57 = arith.constant 3.200000e+01 : f32
    %190 = vector.broadcast %cst_57 : f32 to vector<32x1xf32>
    %191 = arith.divf %189, %190 : vector<32x1xf32>
    %192 = vector.broadcast %184 : vector<32x1xf32> to vector<32x32xf32>
    %193 = arith.subf %180, %192 : vector<32x32xf32>
    %cst_58 = arith.constant 9.99999974E-6 : f32
    %194 = vector.broadcast %cst_58 : f32 to vector<32x1xf32>
    %195 = arith.addf %191, %194 : vector<32x1xf32>
    %196 = math.rsqrt %195 : vector<32x1xf32>
    %197 = vector.broadcast %196 : vector<32x1xf32> to vector<32x32xf32>
    %198 = arith.mulf %193, %197 : vector<32x32xf32>
    %199 = vector.broadcast %116 : vector<1x32xf32> to vector<32x32xf32>
    %200 = arith.mulf %198, %199 : vector<32x32xf32>
    %201 = vector.broadcast %117 : vector<1x32xf32> to vector<32x32xf32>
    %202 = arith.addf %200, %201 : vector<32x32xf32>
    %c0_59 = arith.constant 0 : index
    %c0_60 = arith.constant 0 : index
    %203 = vector.load %arg7[%c0_59, %c0_60] : memref<32x32xf32, #tpu.memory_space<vmem>>, vector<32x32xf32>
    tpu.vector_store %arg7[%c0_59, %c0_60], %202 {strides = array<i32>} : memref<32x32xf32, #tpu.memory_space<vmem>>, vector<32x32xf32>,
    return
  }
}

</mosaic_0001>

<bundles_post_ra>
// kernel: eq.29
= control target key start
LH: loop header
LB: loop body
LE: loop exit
PB: predicated region body
PF: predicated region fallthrough
CT: control target
= control target key end

     0   :  { %vm7_vm0 = vcmask 261120   ;;  %s37_s8 = smov 32   ;;  %s38_s9 = smov 64   ;;  %vm13_vm1 = vcmask 1048320   ;;  %vm19_vm2 = vcmask 785920   ;;  %vm25_vm3 = vcmask 523520   ;;  %s55_s0 = inlined_call_operand.vmem [shape: s32[4,32], index: 0, kind: input, shape index: {}]   ;;  %s56_s1 = inlined_call_operand.vmem [shape: s32[128], index: 1, kind: output, shape index: {}]  }
   0x1   :  { %v4_v0 = vld [vmem:[%s55_s0] sm:$0xf]  ;;  %s36_s0 = smov 96  }
   0x2   :  { %5 = vst [vmem:[#allocation1] sm:$0xf] %v4_v0 }
   0x9   :  { %v10_v1 = vld [vmem:[#allocation1 + $0x3] sm:$0x1]   ;;  %v22_v2 = vld [vmem:[#allocation1 + $0x1] sm:$0x1]   ;;  %v6_v3 = vld [vmem:[#allocation1] sm:$0x1]  }
   0xa   :  { %11 = vrot.lane.b32.xlu0 %v10_v1, %s36_s0  ;;  %23 = vrot.lane.b32.xlu1 %v22_v2, %s37_s8  ;;  %v16_v4 = vld [vmem:[#allocation1 + $0x2] sm:$0x1]   ;;  %8 = vst.msk [vmem:[#allocation0] sm:$0x1] %vm7_vm0, %v6_v3  }
   0xe   :  { %17 = vrot.lane.b32.xlu0 %v16_v4, %s38_s9 }
  0x7c   :  { %v12_v5 = vpop.permute.xlu0 %11   ;;  %v24_v6 = vpop.permute.xlu1 %23  }
  0x7d   :  { %14 = vst.msk [vmem:[#allocation0] sm:$0x1] %vm13_vm1, %v12_v5  }
  0x80   :  { %v18_v7 = vpop.permute.xlu0 %17  }
  0x81   :  { %20 = vst.msk [vmem:[#allocation0] sm:$0x1] %vm19_vm2, %v18_v7  }
  0x82   :  { %26 = vst.msk [vmem:[#allocation0] sm:$0x1] %vm25_vm3, %v24_v6  }
  0x89   :  { %v30_v8 = vld [vmem:[#allocation0] sm:$0x1] }
  0x8a   :  { %32 = vst [vmem:[%s56_s1] sm:$0x1] %v30_v8 }

// kernel: embedding_net_forward.1
= control target key start
LH: loop header
LB: loop body
LE: loop exit
PB: predicated region body
PF: predicated region fallthrough
CT: control target
= control target key end

     0   :  { %vm39_vm0 = vcmask 261120   ;;  %s4990_s0 = inlined_call_operand.vmem [shape: f32[32,32], index: 0, kind: input, shape index: {}]   ;;  %s4991_s1 = inlined_call_operand.vmem [shape: f32[32,32], index: 1, kind: input, shape index: {}]   ;;  %s4992_s2 = inlined_call_operand.vmem [shape: f32[32,32], index: 2, kind: input, shape index: {}]   ;;  %s4993_s3 = inlined_call_operand.vmem [shape: f32[320,32], index: 3, kind: input, shape index: {}]   ;;  %s4994_s4 = inlined_call_operand.vmem [shape: f32[16,96], index: 4, kind: input, shape index: {}]   ;;  %s4995_s5 = inlined_call_operand.vmem [shape: f32[128,32], index: 5, kind: input, shape index: {}]   ;;  %s4996_s6 = inlined_call_operand.vmem [shape: f32[128,32], index: 6, kind: input, shape index: {}]   ;;  %s4997_s7 = inlined_call_operand.hbm [shape: f32[32,32], index: 7, kind: output, shape index: {}]  }
   0x1   :  { %v31_v0 = vld [vmem:[%s4992_s2] sm:$0xff]  ;;  %v32_v1 = vld [vmem:[%s4992_s2 + $0x8] sm:$0xff]  ;;  %v33_v2 = vld [vmem:[%s4992_s2 + $0x10] sm:$0xff] }
   0x2   :  { %v3311_v3 = vpack.c.bf16 %v32_v1, %v31_v0  ;;  %vm3800_vm1 = vmpackc.low %vm39_vm0, %vm39_vm0  ;;  %v34_v5 = vld [vmem:[%s4992_s2 + $0x18] sm:$0xff]  ;;  %v27_v6 = vld [vmem:[%s4990_s0] sm:$0xff] }
   0x3   :  { %v3317_v7 = vpack.c.bf16 %v34_v5, %v33_v2  ;;  %3049 = vmatprep.mubr.msk.f32.mxu0 %vm39_vm0, %v27_v6  ;;  %v181_v8 = vld [vmem:[%s4993_s3] sm:$0xff]  ;;  %v182_v9 = vld [vmem:[%s4993_s3 + $0x8] sm:$0xff]  ;;  %v183_v10 = vld [vmem:[%s4993_s3 + $0x10] sm:$0xff] }
   0x4   :  { %3313 = vmatprep.subr.msk.bf16.mxu0 %vm3800_vm1, %v3311_v3  ;;  %v3323_v11 = vpack.c.bf16 %v182_v9, %v181_v8  ;;  %v184_v12 = vld [vmem:[%s4993_s3 + $0x18] sm:$0xff] }
   0x5   :  { %3316 = vmatpush3.bf16.xpose.msk.msra.mxu0 %vm3800_vm1, %v3311_v3  ;;  %v3329_v13 = vpack.c.bf16 %v184_v12, %v183_v10 }
   0x6   :  { %3319 = vmatprep.subr.msk.bf16.mxu0 %vm3800_vm1, %v3317_v7  ;;  %3325 = vmatprep.subr.msk.bf16.mxu1 %vm3800_vm1, %v3323_v11 }
   0x7   :  { %3328 = vmatpush3.bf16.xpose.msk.msra.mxu1 %vm3800_vm1, %v3323_v11 }
   0x8   :  { %12 = vsyncpa [#allocation3], 0  ;;  %3331 = vmatprep.subr.msk.bf16.mxu1 %vm3800_vm1, %v3329_v13  ;;  %v185_v14 = vld [vmem:[%s4993_s3 + $0x20] sm:$0xff]  ;;  %v186_v15 = vld [vmem:[%s4993_s3 + $0x28] sm:$0xff]  ;;  %v202_v41 = vlaneseq  ;;  %s3744_s26 = smov 96   ;;  %s3745_s15 = smov 64  }
   0x9   :  { %v3335_v16 = vpack.c.bf16 %v186_v15, %v185_v14  ;;  %v28_v17 = vld [vmem:[%s4990_s0 + $0x8] sm:$0xff]  ;;  %v29_v18 = vld [vmem:[%s4990_s0 + $0x10] sm:$0xff]  ;;  %v188_v20 = vld [vmem:[%s4993_s3 + $0x38] sm:$0xff]  ;;  %vm1278_vm2 = vcmask 130048  }
   0xa   :  { %v187_v19 = vld [vmem:[%s4993_s3 + $0x30] sm:$0xff]  ;;  %v30_v21 = vld [vmem:[%s4990_s0 + $0x18] sm:$0xff]  ;;  %v189_v23 = vld [vmem:[%s4993_s3 + $0x40] sm:$0xff]  ;;  %v3919_v42 = vshrl.u32 %v202_v41, 7 }
   0xb   :  { %v3341_v22 = vpack.c.bf16 %v188_v20, %v187_v19  ;;  %v190_v24 = vld [vmem:[%s4993_s3 + $0x48] sm:$0xff]  ;;  %v191_v26 = vld [vmem:[%s4993_s3 + $0x50] sm:$0xff]  ;;  %v192_v27 = vld [vmem:[%s4993_s3 + $0x58] sm:$0xff] }
   0xc   :  { %v3347_v25 = vpack.c.bf16 %v190_v24, %v189_v23  ;;  %v3353_v28 = vpack.c.bf16 %v192_v27, %v191_v26  ;;  %v35_v29 = vld [vmem:[%s4991_s1] sm:$0xff]  ;;  %v36_v30 = vld [vmem:[%s4991_s1 + $0x8] sm:$0xff]  ;;  %v38_v34 = vld [vmem:[%s4991_s1 + $0x18] sm:$0xff]  ;;  %v204_v43 = vsub.s32 0, %v3919_v42 }
   0xd   :  { %3322 = vmatpush3.bf16.xpose.msk.msra.mxu0 %vm3800_vm1, %v3317_v7  ;;  %v37_v36 = vld [vmem:[%s4991_s1 + $0x10] sm:$0xff]  ;;  %v3925_v44 = vld [vmem:[%s4994_s4] sm:$0xff]  ;;  %v3962_v2 = vld [vmem:[%s4995_s5 + $0x8] sm:$0xff] }
   0xe   :  { %v205_v45 = vrot.slane %v3925_v44, %v204_v43  ;;  %v3935_v49 = vld [vmem:[%s4995_s5] sm:$0xff]  ;;  %v3967_v3 = vld [vmem:[%s4995_s5 + $0x10] sm:$0xff]  ;;  %v3975_v7 = vld [vmem:[%s4995_s5 + $0x18] sm:$0xff] }
   0xf   :  { %3334 = vmatpush3.bf16.xpose.msk.msra.mxu1 %vm3800_vm1, %v3329_v13  ;;  %v3981_v8 = vld [vmem:[%s4995_s5 + $0x20] sm:$0xff]  ;;  %v3990_v11 = vld [vmem:[%s4995_s5 + $0x28] sm:$0xff]  ;;  %v3996_v12 = vld [vmem:[%s4995_s5 + $0x30] sm:$0xff] }
  0x10   :  { %3337 = vmatprep.subr.msk.bf16.mxu1 %vm3800_vm1, %v3335_v16  ;;  %v4005_v15 = vld [vmem:[%s4995_s5 + $0x38] sm:$0xff]  ;;  %v4020_v19 = vld [vmem:[%s4995_s5 + $0x48] sm:$0xff]  ;;  %v4026_v20 = vld [vmem:[%s4995_s5 + $0x50] sm:$0xff] }
  0x11   :  { %v4035_v23 = vld [vmem:[%s4995_s5 + $0x58] sm:$0xff]  ;;  %v4041_v24 = vld [vmem:[%s4995_s5 + $0x60] sm:$0xff]  ;;  %v4050_v27 = vld [vmem:[%s4995_s5 + $0x68] sm:$0xff] }
  0x14   :  { %3050 = vmatmul.mubr.msk.f32.vlgmr.msra.gmra.mrb[0].mxu0 %vm39_vm0, %v28_v17 }
  0x15   :  { %3052 = vmatprep.mubr.msk.f32.mxu0 %vm39_vm0, %v29_v18 }
  0x17   :  { %3340 = vmatpush3.bf16.xpose.msk.msra.mxu1 %vm3800_vm1, %v3335_v16  ;;  %v4011_v16 = vld [vmem:[%s4995_s5 + $0x40] sm:$0xff] }
  0x18   :  { %3053 = vmatmul.mubr.msk.f32.gmra.mrb[2].mxu0 %vm39_vm0, %v30_v21  ;;  %3343 = vmatprep.subr.msk.bf16.mxu1 %vm3800_vm1, %v3341_v22 }
  0x1f   :  { %3346 = vmatpush3.bf16.xpose.msk.msra.mxu1 %vm3800_vm1, %v3341_v22 }
  0x20   :  { %3349 = vmatprep.subr.msk.bf16.mxu1 %vm3800_vm1, %v3347_v25 }
  0x27   :  { %3352 = vmatpush3.bf16.xpose.msk.msra.mxu1 %vm3800_vm1, %v3347_v25 }
  0x28   :  { %3355 = vmatprep.subr.msk.bf16.mxu1 %vm3800_vm1, %v3353_v28 }
  0x2f   :  { %3358 = vmatpush3.bf16.xpose.msk.msra.mxu1 %vm3800_vm1, %v3353_v28  ;;  %v4056_v28 = vld [vmem:[%s4995_s5 + $0x70] sm:$0xff] }
  0xe7   :  { %v3051_v31 = vpop.f32.mrb[0].mxu0 }
  0xe8   :  { %v130_v32 = vpop.f32.mrb[1].mxu0  ;;  %v3902_v35 = vadd.f32 %v3051_v31, %v36_v30  ;;  %v4065_v31 = vld [vmem:[%s4995_s5 + $0x78] sm:$0xff] }
  0xe9   :  { %v3897_v33 = vadd.f32 %v130_v32, %v35_v29 }
  0xeb   :  { %3079 = vmatprep.mubr.msk.f32.mxu1 %vm39_vm0, %v3897_v33  ;;  %v3054_v37 = vpop.f32.mrb[2].mxu0 }
  0xec   :  { %v3909_v38 = vadd.f32 %v3054_v37, %v38_v34  ;;  %3080 = vmatmul.mubr.msk.f32.vlgmr.msra.gmra.mrb[0].mxu1 %vm39_vm0, %v3902_v35  ;;  %v140_v39 = vpop.f32.mrb[3].mxu0  ;;  %v166_v34 = vld [vmem:[%s4996_s6 + $0x8] sm:$0xff]  ;;  %v165_v37 = vld [vmem:[%s4996_s6] sm:$0xff] }
  0xed   :  { %v3913_v40 = vadd.f32 %v140_v39, %v37_v36 }
  0xef   :  { %3082 = vmatprep.mubr.msk.f32.mxu1 %vm39_vm0, %v3913_v40 }
  0xf0   :  { %3083 = vmatmul.mubr.msk.f32.gmra.mrb[2].mxu1 %vm39_vm0, %v3909_v38 }
 0x1bf   :  { %v3081_v46 = vpop.f32.mrb[0].mxu1 }
 0x1c0   :  { %v3930_v47 = vadd.f32 %v3081_v46, %v205_v45  ;;  %v320_v48 = vpop.f32.mrb[1].mxu1 }
 0x1c1   :  { %v321_v50 = vadd.f32 %v320_v48, %v205_v45  ;;  %v168_v48 = vld [vmem:[%s4996_s6 + $0x18] sm:$0xff] }
 0x1c2   :  { %v340_v5 = vmul.f32 %v3930_v47, %v3962_v2  ;;  %v344_v13 = vmul.f32 %v3930_v47, %v3990_v11  ;;  %v348_v21 = vmul.f32 %v3930_v47, %v4020_v19  ;;  %v352_v29 = vmul.f32 %v3930_v47, %v4050_v27 }
 0x1c3   :  { %v3084_v51 = vpop.f32.mrb[2].mxu1  ;;  %v3938_v52 = vpack.i.bf16 %v3930_v47, %v321_v50  ;;  %v339_v53 = vmul.f32 %v321_v50, %v3935_v49  ;;  %v343_v10 = vmul.f32 %v321_v50, %v3981_v8  ;;  %v347_v18 = vmul.f32 %v321_v50, %v4011_v16  ;;  %v167_v47 = vld [vmem:[%s4996_s6 + $0x10] sm:$0xff] }
 0x1c4   :  { %v3941_v54 = vadd.f32 %v3084_v51, %v205_v45  ;;  %v330_v55 = vpop.f32.mrb[3].mxu1  ;;  %v351_v26 = vmul.f32 %v321_v50, %v4041_v24 }
 0x1c5   :  { %v331_v56 = vadd.f32 %v330_v55, %v205_v45  ;;  %3487 = vrot.lane.b32.xlu0 %v3938_v52, %s3744_s26  ;;  %3093 = vmatprep.mubr.msk.f32.mxu0 %vm39_vm0, %v339_v53 }
 0x1c6   :  { %v342_v9 = vmul.f32 %v3941_v54, %v3975_v7  ;;  %v346_v17 = vmul.f32 %v3941_v54, %v4005_v15  ;;  %v350_v25 = vmul.f32 %v3941_v54, %v4035_v23  ;;  %v354_v32 = vmul.f32 %v3941_v54, %v4065_v31 }
 0x1c7   :  { %v3947_v57 = vpack.i.bf16 %v3941_v54, %v331_v56  ;;  %v341_v6 = vmul.f32 %v331_v56, %v3967_v3  ;;  %v345_v14 = vmul.f32 %v331_v56, %v3996_v12  ;;  %v349_v22 = vmul.f32 %v331_v56, %v4026_v20 }
 0x1c8   :  { %v353_v30 = vmul.f32 %v331_v56, %v4056_v28  ;;  %v170_v56 = vld [vmem:[%s4996_s6 + $0x28] sm:$0xff] }
 0x1c9   :  { %3492 = vrot.lane.b32.xlu0 %v3947_v57, %s3744_s26 }
 0x237   :  { %v3488_v58 = vpop.permute.xlu0 %3487 }
 0x238   :  { %v3490_v59 = vunpack.i.h.bf16 %v3488_v58  ;;  %v3489_v60 = vunpack.i.l.bf16 %v3488_v58 }
 0x23a   :  { %v3359_v61 = vpack.c.bf16 %v3490_v59, %v3489_v60 }
 0x23b   :  { %v3493_v62 = vpop.permute.xlu0 %3492 }
 0x23c   :  { %v3495_v63 = vunpack.i.h.bf16 %v3493_v62  ;;  %v3494_v0 = vunpack.i.l.bf16 %v3493_v62  ;;  %3361 = vmatprep.subr.msk.bf16.mxu0 %vm3800_vm1, %v3359_v61 }
 0x23d   :  { %3364 = vmatpush3.bf16.xpose.msk.msra.mxu0 %vm3800_vm1, %v3359_v61 }
 0x23e   :  { %v3365_v1 = vpack.c.bf16 %v3495_v63, %v3494_v0  ;;  %v169_v63 = vld [vmem:[%s4996_s6 + $0x20] sm:$0xff] }
 0x240   :  { %3367 = vmatprep.subr.msk.bf16.mxu0 %vm3800_vm1, %v3365_v1 }
 0x245   :  { %3370 = vmatpush3.bf16.xpose.msk.msra.mxu0 %vm3800_vm1, %v3365_v1 }
 0x24c   :  { %3094 = vmatmul.mubr.msk.f32.vlgmr.msra.gmra.mrb[4].mxu0 %vm39_vm0, %v340_v5 }
 0x24d   :  { %3096 = vmatprep.mubr.msk.f32.mxu0 %vm39_vm0, %v341_v6 }
 0x250   :  { %3097 = vmatmul.mubr.msk.f32.gmra.mrb[6].mxu0 %vm39_vm0, %v342_v9  ;;  %v172_v9 = vld [vmem:[%s4996_s6 + $0x38] sm:$0xff] }
 0x251   :  { %3099 = vmatprep.mubr.msk.f32.mxu0 %vm39_vm0, %v343_v10 }
 0x254   :  { %3100 = vmatmul.mubr.msk.f32.gmra.mrb[8].mxu0 %vm39_vm0, %v344_v13 }
 0x255   :  { %3102 = vmatprep.mubr.msk.f32.mxu0 %vm39_vm0, %v345_v14  ;;  %v176_v14 = vld [vmem:[%s4996_s6 + $0x58] sm:$0xff] }
 0x258   :  { %3103 = vmatmul.mubr.msk.f32.gmra.mrb[10].mxu0 %vm39_vm0, %v346_v17 }
 0x259   :  { %3105 = vmatprep.mubr.msk.f32.mxu0 %vm39_vm0, %v347_v18 }
 0x25c   :  { %3106 = vmatmul.mubr.msk.f32.gmra.mrb[12].mxu0 %vm39_vm0, %v348_v21  ;;  %v171_v21 = vld [vmem:[%s4996_s6 + $0x30] sm:$0xff] }
 0x25d   :  { %3108 = vmatprep.mubr.msk.f32.mxu0 %vm39_vm0, %v349_v22 }
 0x260   :  { %3109 = vmatmul.mubr.msk.f32.gmra.mrb[14].mxu0 %vm39_vm0, %v350_v25 }
 0x261   :  { %3111 = vmatprep.mubr.msk.f32.mxu0 %vm39_vm0, %v351_v26 }
 0x264   :  { %3112 = vmatmul.mubr.msk.f32.gmra.mrb[16].mxu0 %vm39_vm0, %v352_v29  ;;  %v178_v29 = vld [vmem:[%s4996_s6 + $0x68] sm:$0xff] }
 0x265   :  { %3114 = vmatprep.mubr.msk.f32.mxu0 %vm39_vm0, %v353_v30 }
 0x268   :  { %3115 = vmatmul.mubr.msk.f32.gmra.mrb[18].mxu0 %vm39_vm0, %v354_v32 }
 0x31f   :  { %v3095_v36 = vpop.f32.mrb[4].mxu0 }
 0x320   :  { %v4078_v39 = vadd.f32 %v3095_v36, %v166_v34  ;;  %v489_v41 = vpop.f32.mrb[5].mxu0  ;;  %v174_v36 = vld [vmem:[%s4996_s6 + $0x48] sm:$0xff] }
 0x321   :  { %v4080_v45 = vadd.f32 %v489_v41, %v165_v37 }
 0x322   :  { %v571_v46 = vsel %vm39_vm0, %v4078_v39, -inf }
 0x323   :  { %572 = vmax.xlane.f32.xlu1 %v571_v46  ;;  %v3098_v50 = vpop.f32.mrb[6].mxu0  ;;  %v568_v55 = vsel %vm39_vm0, %v4080_v45, -inf }
 0x324   :  { %v499_v51 = vpop.f32.mrb[7].mxu0  ;;  %v4092_v54 = vadd.f32 %v3098_v50, %v168_v48 }
 0x325   :  { %v4090_v53 = vadd.f32 %v499_v51, %v167_v47  ;;  %v180_v47 = vld [vmem:[%s4996_s6 + $0x78] sm:$0xff] }
 0x326   :  { %v577_v62 = vsel %vm39_vm0, %v4092_v54, -inf }
 0x327   :  { %v3101_v58 = vpop.f32.mrb[8].mxu0  ;;  %569 = vmax.xlane.f32.xlu1 %v568_v55  ;;  %v574_v59 = vsel %vm39_vm0, %v4090_v53, -inf  ;;  %v173_v55 = vld [vmem:[%s4996_s6 + $0x40] sm:$0xff] }
 0x328   :  { %v509_v60 = vpop.f32.mrb[9].mxu0  ;;  %575 = vmax.xlane.f32.xlu0 %v574_v59  ;;  %v4101_v61 = vadd.f32 %v3101_v58, %v170_v56 }
 0x329   :  { %v4108_v5 = vadd.f32 %v509_v60, %v169_v63 }
 0x32a   :  { %v583_v6 = vsel %vm39_vm0, %v4101_v61, -inf }
 0x32b   :  { %v3104_v0 = vpop.f32.mrb[10].mxu0  ;;  %578 = vmax.xlane.f32.xlu1 %v577_v62  ;;  %v580_v18 = vsel %vm39_vm0, %v4108_v5, -inf }
 0x32c   :  { %v519_v1 = vpop.f32.mrb[11].mxu0  ;;  %v4118_v17 = vadd.f32 %v3104_v0, %v172_v9  ;;  %v175_v0 = vld [vmem:[%s4996_s6 + $0x50] sm:$0xff]  ;;  %v177_v9 = vld [vmem:[%s4996_s6 + $0x60] sm:$0xff] }
 0x32d   :  { %v4130_v30 = vadd.f32 %v519_v1, %v171_v21 }
 0x32e   :  { %v589_v34 = vsel %vm39_vm0, %v4118_v17, -inf }
 0x32f   :  { %v3107_v10 = vpop.f32.mrb[12].mxu0  ;;  %584 = vmax.xlane.f32.xlu1 %v583_v6  ;;  %v586_v51 = vsel %vm39_vm0, %v4130_v30, -inf }
 0x330   :  { %v529_v13 = vpop.f32.mrb[13].mxu0  ;;  %v4144_v48 = vadd.f32 %v3107_v10, %v174_v36 }
 0x331   :  { %v4155_v60 = vadd.f32 %v529_v13, %v173_v55 }
 0x332   :  { %v595_v63 = vsel %vm39_vm0, %v4144_v48, -inf }
 0x333   :  { %v3110_v22 = vpop.f32.mrb[14].mxu0  ;;  %581 = vmax.xlane.f32.xlu1 %v580_v18  ;;  %v592_v6 = vsel %vm39_vm0, %v4155_v60, -inf }
 0x334   :  { %v4125_v25 = vadd.f32 %v3110_v22, %v176_v14  ;;  %v539_v26 = vpop.f32.mrb[15].mxu0  ;;  %v179_v14 = vld [vmem:[%s4996_s6 + $0x70] sm:$0xff] }
 0x335   :  { %v4164_v1 = vadd.f32 %v539_v26, %v175_v0 }
 0x336   :  { %v601_v32 = vsel %vm39_vm0, %v4125_v25, -inf }
 0x337   :  { %v3113_v37 = vpop.f32.mrb[16].mxu0  ;;  %602 = vmax.xlane.f32.xlu0 %v601_v32  ;;  %590 = vmax.xlane.f32.xlu1 %v589_v34  ;;  %v598_v13 = vsel %vm39_vm0, %v4164_v1, -inf }
 0x338   :  { %v4139_v41 = vadd.f32 %v3113_v37, %v178_v29  ;;  %v549_v46 = vpop.f32.mrb[17].mxu0 }
 0x339   :  { %v4171_v10 = vadd.f32 %v549_v46, %v177_v9 }
 0x33a   :  { %v607_v50 = vsel %vm39_vm0, %v4139_v41, -inf }
 0x33b   :  { %v3116_v56 = vpop.f32.mrb[18].mxu0  ;;  %608 = vmax.xlane.f32.xlu0 %v607_v50  ;;  %587 = vmax.xlane.f32.xlu1 %v586_v51  ;;  %v604_v21 = vsel %vm39_vm0, %v4171_v10, -inf }
 0x33c   :  { %v4153_v58 = vadd.f32 %v3116_v56, %v180_v47  ;;  %v559_v59 = vpop.f32.mrb[19].mxu0 }
 0x33d   :  { %v4178_v18 = vadd.f32 %v559_v59, %v179_v14 }
 0x33e   :  { %v613_v62 = vsel %vm39_vm0, %v4153_v58, -inf }
 0x33f   :  { %614 = vmax.xlane.f32.xlu0 %v613_v62  ;;  %596 = vmax.xlane.f32.xlu1 %v595_v63  ;;  %v610_v22 = vsel %vm39_vm0, %v4178_v18, -inf }
 0x343   :  { %593 = vmax.xlane.f32.xlu1 %v592_v6 }
 0x347   :  { %599 = vmax.xlane.f32.xlu1 %v598_v13 }
 0x34b   :  { %605 = vmax.xlane.f32.xlu1 %v604_v21 }
 0x34f   :  { %611 = vmax.xlane.f32.xlu1 %v610_v22 }
 0x3b0   :  { %v573_v26 = vpop.xlane.xlu1 %572 }
 0x3b1   :  { %v617_v29 = vsub.f32 %v4078_v39, %v573_v26 }
 0x3b3   :  { %v634_v32 = vmul.f32 1.442695, %v617_v29 }
 0x3b4   :  { %v570_v34 = vpop.xlane.xlu1 %569 }
 0x3b5   :  { %3526 = vpow2.f32 %v634_v32  ;;  %v616_v36 = vsub.f32 %v4080_v45, %v570_v34  ;;  %v576_v37 = vpop.xlane.xlu0 %575 }
 0x3b6   :  { %v618_v46 = vsub.f32 %v4090_v53, %v576_v37 }
 0x3b7   :  { %v632_v47 = vmul.f32 1.442695, %v616_v36 }
 0x3b8   :  { %v636_v50 = vmul.f32 1.442695, %v618_v46  ;;  %v579_v51 = vpop.xlane.xlu1 %578 }
 0x3b9   :  { %3528 = vpow2.f32 %v632_v47  ;;  %v619_v55 = vsub.f32 %v4092_v54, %v579_v51 }
 0x3ba   :  { %3530 = vpow2.f32 %v636_v50 }
 0x3bb   :  { %v638_v56 = vmul.f32 1.442695, %v619_v55 }
 0x3bc   :  { %v585_v59 = vpop.xlane.xlu1 %584 }
 0x3bd   :  { %3532 = vpow2.f32 %v638_v56  ;;  %v621_v39 = vsub.f32 %v4101_v61, %v585_v59 }
 0x3bf   :  { %v4189_v62 = vpop.eup %3526  ;;  %v642_v63 = vmul.f32 1.442695, %v621_v39 }
 0x3c0   :  { %v582_v0 = vpop.xlane.xlu1 %581  ;;  %v667_v45 = vsel %vm39_vm0, %v4189_v62, 0.0 }
 0x3c1   :  { %3534 = vpow2.f32 %v642_v63  ;;  %v620_v53 = vsub.f32 %v4108_v5, %v582_v0  ;;  %668 = vadd.xlane.f32.xlu0 %v667_v45 }
 0x3c3   :  { %v4194_v6 = vpop.eup %3528  ;;  %v640_v54 = vmul.f32 1.442695, %v620_v53 }
 0x3c4   :  { %v591_v9 = vpop.xlane.xlu1 %590  ;;  %v664_v13 = vsel %vm39_vm0, %v4194_v6, 0.0  ;;  %v4198_v14 = vpop.eup %3530 }
 0x3c5   :  { %3536 = vpow2.f32 %v640_v54  ;;  %v623_v61 = vsub.f32 %v4118_v17, %v591_v9  ;;  %665 = vadd.xlane.f32.xlu1 %v664_v13  ;;  %v670_v5 = vsel %vm39_vm0, %v4198_v14, 0.0  ;;  %v603_v32 = vpop.xlane.xlu0 %602 }
 0x3c6   :  { %v627_v37 = vsub.f32 %v4125_v25, %v603_v32 }
 0x3c7   :  { %v4201_v21 = vpop.eup %3532  ;;  %v646_v22 = vmul.f32 1.442695, %v623_v61 }
 0x3c8   :  { %v588_v26 = vpop.xlane.xlu1 %587  ;;  %v673_v29 = vsel %vm39_vm0, %v4201_v21, 0.0 }
 0x3c9   :  { %v622_v34 = vsub.f32 %v4130_v30, %v588_v26  ;;  %671 = vadd.xlane.f32.xlu1 %v670_v5  ;;  %674 = vadd.xlane.f32.xlu0 %v673_v29  ;;  %3538 = vpow2.f32 %v646_v22  ;;  %v654_v30 = vmul.f32 1.442695, %v627_v37 }
 0x3cb   :  { %v4208_v36 = vpop.eup %3534  ;;  %v644_v17 = vmul.f32 1.442695, %v622_v34  ;;  %v609_v34 = vpop.xlane.xlu0 %608 }
 0x3cc   :  { %v597_v46 = vpop.xlane.xlu1 %596  ;;  %v679_v47 = vsel %vm39_vm0, %v4208_v36, 0.0 }
 0x3cd   :  { %v625_v50 = vsub.f32 %v4144_v48, %v597_v46  ;;  %680 = vadd.xlane.f32.xlu0 %v679_v47  ;;  %3540 = vpow2.f32 %v644_v17 }
 0x3cf   :  { %v4214_v51 = vpop.eup %3536  ;;  %v650_v55 = vmul.f32 1.442695, %v625_v50  ;;  %v629_v50 = vsub.f32 %v4139_v41, %v609_v34 }
 0x3d0   :  { %v594_v56 = vpop.xlane.xlu1 %593  ;;  %v676_v59 = vsel %vm39_vm0, %v4214_v51, 0.0 }
 0x3d1   :  { %v624_v39 = vsub.f32 %v4155_v60, %v594_v56  ;;  %677 = vadd.xlane.f32.xlu1 %v676_v59  ;;  %3542 = vpow2.f32 %v650_v55  ;;  %v615_v55 = vpop.xlane.xlu0 %614  ;;  %v658_v59 = vmul.f32 1.442695, %v629_v50 }
 0x3d2   :  { %3544 = vpow2.f32 %v654_v30  ;;  %v631_v30 = vsub.f32 %v4153_v58, %v615_v55 }
 0x3d3   :  { %v648_v25 = vmul.f32 1.442695, %v624_v39  ;;  %v4219_v63 = vpop.eup %3538 }
 0x3d4   :  { %v600_v0 = vpop.xlane.xlu1 %599  ;;  %v685_v45 = vsel %vm39_vm0, %v4219_v63, 0.0 }
 0x3d5   :  { %3546 = vpow2.f32 %v648_v25  ;;  %v626_v48 = vsub.f32 %v4164_v1, %v600_v0  ;;  %686 = vadd.xlane.f32.xlu0 %v685_v45 }
 0x3d7   :  { %v652_v53 = vmul.f32 1.442695, %v626_v48  ;;  %v4224_v54 = vpop.eup %3540 }
 0x3d8   :  { %v682_v60 = vsel %vm39_vm0, %v4224_v54, 0.0  ;;  %v606_v32 = vpop.xlane.xlu1 %605 }
 0x3d9   :  { %3548 = vpow2.f32 %v652_v53  ;;  %683 = vadd.xlane.f32.xlu1 %v682_v60  ;;  %v628_v17 = vsub.f32 %v4171_v10, %v606_v32 }
 0x3db   :  { %v4228_v9 = vpop.eup %3542  ;;  %v656_v46 = vmul.f32 1.442695, %v628_v17 }
 0x3dc   :  { %v691_v13 = vsel %vm39_vm0, %v4228_v9, 0.0  ;;  %v4232_v61 = vpop.eup %3544  ;;  %v612_v37 = vpop.xlane.xlu1 %611 }
 0x3dd   :  { %692 = vadd.xlane.f32.xlu0 %v691_v13  ;;  %v697_v26 = vsel %vm39_vm0, %v4232_v61, 0.0  ;;  %v630_v47 = vsub.f32 %v4178_v18, %v612_v37  ;;  %3550 = vpow2.f32 %v656_v46 }
 0x3df   :  { %v4234_v1 = vpop.eup %3546  ;;  %v660_v56 = vmul.f32 1.442695, %v630_v47 }
 0x3e0   :  { %v688_v22 = vsel %vm39_vm0, %v4234_v1, 0.0 }
 0x3e1   :  { %689 = vadd.xlane.f32.xlu1 %v688_v22  ;;  %698 = vadd.xlane.f32.xlu0 %v697_v26  ;;  %3552 = vpow2.f32 %v660_v56 }
 0x3e2   :  { %3554 = vpow2.f32 %v658_v59 }
 0x3e3   :  { %v4240_v5 = vpop.eup %3548 }
 0x3e4   :  { %v694_v29 = vsel %vm39_vm0, %v4240_v5, 0.0 }
 0x3e5   :  { %695 = vadd.xlane.f32.xlu0 %v694_v29 }
 0x3f2   :  { %3497 = vrot.lane.b32.xlu1 %v3938_v52, %s3745_s15  ;;  %v662_v52 = vmul.f32 1.442695, %v631_v30 }
 0x3f4   :  { %3556 = vpow2.f32 %v662_v52 }
 0x3fb   :  { %3502 = vrot.lane.b32.xlu0 %v3947_v57, %s3745_s15  ;;  %v4252_v57 = vpop.eup %3550 }
 0x3fc   :  { %v700_v10 = vsel %vm39_vm0, %v4252_v57, 0.0  ;;  %v4256_v39 = vpop.eup %3552 }
 0x3fd   :  { %v4258_v18 = vpop.eup %3554  ;;  %v706_v41 = vsel %vm39_vm0, %v4256_v39, 0.0 }
 0x3fe   :  { %v4262_v58 = vpop.eup %3556  ;;  %v703_v25 = vsel %vm39_vm0, %v4258_v18, 0.0 }
 0x3ff   :  { %v709_v0 = vsel %vm39_vm0, %v4262_v58, 0.0 }
 0x416   :  { %701 = vadd.xlane.f32.xlu1 %v700_v10 }
 0x41a   :  { %707 = vadd.xlane.f32.xlu1 %v706_v41  ;;  %704 = vadd.xlane.f32.xlu0 %v703_v25 }
 0x41e   :  { %710 = vadd.xlane.f32.xlu1 %v709_v0 }
 0x44e   :  { %v669_v45 = vpop.xlane.xlu0 %668 }
 0x452   :  { %v666_v48 = vpop.xlane.xlu1 %665 }
 0x453   :  { %3558 = vrcp.f32 %v666_v48 }
 0x454   :  { %3560 = vrcp.f32 %v669_v45 }
 0x456   :  { %v675_v60 = vpop.xlane.xlu0 %674  ;;  %v672_v22 = vpop.xlane.xlu1 %671 }
 0x457   :  { %3562 = vrcp.f32 %v672_v22 }
 0x458   :  { %3564 = vrcp.f32 %v675_v60 }
 0x45a   :  { %v681_v26 = vpop.xlane.xlu0 %680 }
 0x45d   :  { %v3559_v53 = vpop.eup %3558 }
 0x45e   :  { %v713_v13 = vmul.f32 %v3559_v53, %v4194_v6  ;;  %v678_v29 = vpop.xlane.xlu1 %677  ;;  %v3561_v41 = vpop.eup %3560 }
 0x45f   :  { %3566 = vrcp.f32 %v678_v29  ;;  %v715_v0 = vmul.f32 %v3561_v41, %v4189_v62 }
 0x460   :  { %3125 = vmatprep.mubr.msk.f32.mxu1 %vm39_vm0, %v713_v13  ;;  %3568 = vrcp.f32 %v681_v26 }
 0x461   :  { %v3563_v25 = vpop.eup %3562 }
 0x462   :  { %v687_v32 = vpop.xlane.xlu0 %686  ;;  %v3565_v48 = vpop.eup %3564  ;;  %v717_v45 = vmul.f32 %v3563_v25, %v4198_v14 }
 0x463   :  { %v719_v60 = vmul.f32 %v3565_v48, %v4201_v21 }
 0x466   :  { %v684_v34 = vpop.xlane.xlu1 %683 }
 0x467   :  { %3570 = vrcp.f32 %v684_v34 }
 0x468   :  { %3572 = vrcp.f32 %v687_v32 }
 0x469   :  { %v3567_v53 = vpop.eup %3566 }
 0x46a   :  { %v693_v17 = vpop.xlane.xlu0 %692  ;;  %v3569_v13 = vpop.eup %3568  ;;  %v721_v22 = vmul.f32 %v3567_v53, %v4214_v51 }
 0x46b   :  { %v723_v62 = vmul.f32 %v3569_v13, %v4208_v36 }
 0x46e   :  { %v690_v37 = vpop.xlane.xlu1 %689  ;;  %v699_v46 = vpop.xlane.xlu0 %698 }
 0x46f   :  { %3574 = vrcp.f32 %v690_v37 }
 0x470   :  { %3576 = vrcp.f32 %v693_v17 }
 0x471   :  { %v3571_v26 = vpop.eup %3570 }
 0x472   :  { %v3498_v47 = vpop.permute.xlu1 %3497  ;;  %v696_v50 = vpop.xlane.xlu0 %695  ;;  %v725_v29 = vmul.f32 %v3571_v26, %v4224_v54 }
 0x473   :  { %v3500_v55 = vunpack.i.h.bf16 %v3498_v47  ;;  %v3499_v30 = vunpack.i.l.bf16 %v3498_v47  ;;  %3578 = vrcp.f32 %v696_v50  ;;  %v3573_v14 = vpop.eup %3572 }
 0x474   :  { %3580 = vrcp.f32 %v699_v46  ;;  %v727_v21 = vmul.f32 %v3573_v14, %v4219_v63 }
 0x475   :  { %v3371_v56 = vpack.c.bf16 %v3500_v55, %v3499_v30 }
 0x476   :  { %v3503_v6 = vpop.permute.xlu0 %3502 }
 0x477   :  { %3372 = vmatprep.subr.bf16.mxu1 %v3371_v56  ;;  %v3505_v59 = vunpack.i.h.bf16 %v3503_v6  ;;  %v3504_v52 = vunpack.i.l.bf16 %v3503_v6 }
 0x478   :  { %3374 = vmatpush3.bf16.msra.mxu1 %v3371_v56 }
 0x479   :  { %v3375_v10 = vpack.c.bf16 %v3505_v59, %v3504_v52  ;;  %v3575_v32 = vpop.eup %3574  ;;  %v194_v52 = vld [vmem:[%s4993_s3 + $0x68] sm:$0xff] }
 0x47a   :  { %v3577_v34 = vpop.eup %3576  ;;  %v729_v51 = vmul.f32 %v3575_v32, %v4234_v1 }
 0x47b   :  { %3376 = vmatprep.subr.bf16.mxu1 %v3375_v10  ;;  %v731_v36 = vmul.f32 %v3577_v34, %v4228_v9 }
 0x47c   :  { %3378 = vmatpush3.bf16.msra.mxu1 %v3375_v10  ;;  %v196_v10 = vld [vmem:[%s4993_s3 + $0x78] sm:$0xff] }
 0x47d   :  { %v3579_v17 = vpop.eup %3578 }
 0x47e   :  { %v3581_v37 = vpop.eup %3580  ;;  %v733_v54 = vmul.f32 %v3579_v17, %v4240_v5 }
 0x47f   :  { %3126 = vmatmul.mubr.msk.f32.vlgmr.msra.gmra.mrb[4].mxu1 %vm39_vm0, %v715_v0  ;;  %v735_v46 = vmul.f32 %v3581_v37, %v4232_v61 }
 0x480   :  { %3128 = vmatprep.mubr.msk.f32.mxu1 %vm39_vm0, %v717_v45 }
 0x483   :  { %3129 = vmatmul.mubr.msk.f32.gmra.mrb[6].mxu1 %vm39_vm0, %v719_v60 }
 0x484   :  { %3131 = vmatprep.mubr.msk.f32.mxu1 %vm39_vm0, %v721_v22 }
 0x487   :  { %3132 = vmatmul.mubr.msk.f32.gmra.mrb[8].mxu1 %vm39_vm0, %v723_v62 }
 0x488   :  { %3134 = vmatprep.mubr.msk.f32.mxu1 %vm39_vm0, %v725_v29 }
 0x48b   :  { %3135 = vmatmul.mubr.msk.f32.gmra.mrb[10].mxu1 %vm39_vm0, %v727_v21 }
 0x48c   :  { %3137 = vmatprep.mubr.msk.f32.mxu1 %vm39_vm0, %v729_v51 }
 0x48f   :  { %3138 = vmatmul.mubr.msk.f32.gmra.mrb[12].mxu1 %vm39_vm0, %v731_v36 }
 0x490   :  { %3140 = vmatprep.mubr.msk.f32.mxu1 %vm39_vm0, %v733_v54 }
 0x493   :  { %3141 = vmatmul.mubr.msk.f32.gmra.mrb[14].mxu1 %vm39_vm0, %v735_v46 }
 0x4a3   :  { %v702_v63 = vpop.xlane.xlu1 %701 }
 0x4a4   :  { %3582 = vrcp.f32 %v702_v63 }
 0x4a7   :  { %v708_v1 = vpop.xlane.xlu1 %707  ;;  %v705_v47 = vpop.xlane.xlu0 %704 }
 0x4a8   :  { %3584 = vrcp.f32 %v708_v1 }
 0x4a9   :  { %3586 = vrcp.f32 %v705_v47 }
 0x4ab   :  { %v711_v50 = vpop.xlane.xlu1 %710 }
 0x4ac   :  { %3588 = vrcp.f32 %v711_v50 }
 0x4ae   :  { %v3583_v9 = vpop.eup %3582 }
 0x4af   :  { %v737_v55 = vmul.f32 %v3583_v9, %v4252_v57  ;;  %v193_v57 = vld [vmem:[%s4993_s3 + $0x60] sm:$0xff] }
 0x4b1   :  { %3143 = vmatprep.mubr.msk.f32.mxu1 %vm39_vm0, %v737_v55 }
 0x4b2   :  { %v3585_v5 = vpop.eup %3584 }
 0x4b3   :  { %v3587_v30 = vpop.eup %3586  ;;  %v741_v56 = vmul.f32 %v3585_v5, %v4256_v39  ;;  %v195_v39 = vld [vmem:[%s4993_s3 + $0x70] sm:$0xff] }
 0x4b4   :  { %v739_v61 = vmul.f32 %v3587_v30, %v4258_v18  ;;  %v3379_v18 = vpack.c.bf16 %v194_v52, %v193_v57 }
 0x4b6   :  { %v3589_v6 = vpop.eup %3588  ;;  %3144 = vmatmul.mubr.msk.f32.gmra.mrb[16].mxu1 %vm39_vm0, %v739_v61  ;;  %3381 = vmatprep.subr.msk.bf16.mxu0 %vm3800_vm1, %v3379_v18 }
 0x4b7   :  { %3146 = vmatprep.mubr.msk.f32.mxu1 %vm39_vm0, %v741_v56  ;;  %v743_v59 = vmul.f32 %v3589_v6, %v4262_v58  ;;  %v3385_v58 = vpack.c.bf16 %v196_v10, %v195_v39  ;;  %3384 = vmatpush3.bf16.xpose.msk.msra.mxu0 %vm3800_vm1, %v3379_v18 }
 0x4b9   :  { %3387 = vmatprep.subr.msk.bf16.mxu0 %vm3800_vm1, %v3385_v58 }
 0x4ba   :  { %3147 = vmatmul.mubr.msk.f32.gmra.mrb[18].mxu1 %vm39_vm0, %v743_v59 }
 0x4bf   :  { %3390 = vmatpush3.bf16.xpose.msk.msra.mxu0 %vm3800_vm1, %v3385_v58 }
 0x552   :  { %v3127_v41 = vpop.f32.mrb[4].mxu1 }
 0x553   :  { %v870_v25 = vpop.f32.mrb[5].mxu1  ;;  %v950_v53 = vmul.f32 %v3127_v41, %v3962_v2 }
 0x554   :  { %v949_v22 = vmul.f32 %v870_v25, %v3935_v49 }
 0x556   :  { %v3130_v0 = vpop.f32.mrb[6].mxu1 }
 0x557   :  { %v880_v48 = vpop.f32.mrb[7].mxu1  ;;  %v952_v32 = vmul.f32 %v3130_v0, %v3975_v7 }
 0x558   :  { %v951_v51 = vmul.f32 %v880_v48, %v3967_v3 }
 0x55a   :  { %v3133_v45 = vpop.f32.mrb[8].mxu1 }
 0x55b   :  { %v954_v60 = vmul.f32 %v3133_v45, %v3990_v11  ;;  %v890_v13 = vpop.f32.mrb[9].mxu1 }
 0x55c   :  { %v953_v26 = vmul.f32 %v890_v13, %v3981_v8 }
 0x55d   :  { %v966_v62 = vadd.f32 %v954_v60, %v950_v53 }
 0x55e   :  { %v965_v14 = vadd.f32 %v953_v26, %v949_v22  ;;  %v3136_v29 = vpop.f32.mrb[10].mxu1 }
 0x55f   :  { %v956_v21 = vmul.f32 %v3136_v29, %v4005_v15  ;;  %v900_v34 = vpop.f32.mrb[11].mxu1 }
 0x560   :  { %v955_v17 = vmul.f32 %v900_v34, %v3996_v12 }
 0x561   :  { %v968_v2 = vadd.f32 %v956_v21, %v952_v32 }
 0x562   :  { %v967_v36 = vadd.f32 %v955_v17, %v951_v51  ;;  %v3139_v11 = vpop.f32.mrb[12].mxu1 }
 0x563   :  { %v958_v37 = vmul.f32 %v3139_v11, %v4020_v19  ;;  %v910_v49 = vpop.f32.mrb[13].mxu1 }
 0x564   :  { %v957_v8 = vmul.f32 %v910_v49, %v4011_v16  ;;  %v197_v49 = vld [vmem:[%s4993_s3 + $0x80] sm:$0xff] }
 0x565   :  { %v970_v54 = vadd.f32 %v966_v62, %v958_v37 }
 0x566   :  { %v969_v46 = vadd.f32 %v965_v14, %v957_v8  ;;  %v3142_v63 = vpop.f32.mrb[14].mxu1  ;;  %v198_v8 = vld [vmem:[%s4993_s3 + $0x88] sm:$0xff] }
 0x567   :  { %v960_v7 = vmul.f32 %v3142_v63, %v4035_v23  ;;  %v920_v1 = vpop.f32.mrb[15].mxu1  ;;  %v200_v63 = vld [vmem:[%s4993_s3 + $0x98] sm:$0xff] }
 0x568   :  { %v959_v15 = vmul.f32 %v920_v1, %v4026_v20 }
 0x569   :  { %v972_v47 = vadd.f32 %v968_v2, %v960_v7 }
 0x56a   :  { %v971_v3 = vadd.f32 %v967_v36, %v959_v15 }
 0x589   :  { %v3145_v50 = vpop.f32.mrb[16].mxu1 }
 0x58a   :  { %v962_v12 = vmul.f32 %v3145_v50, %v4050_v27  ;;  %v930_v9 = vpop.f32.mrb[17].mxu1 }
 0x58b   :  { %v961_v55 = vmul.f32 %v930_v9, %v4041_v24  ;;  %v979_v24 = vsub.s32 1, %v3919_v42 }
 0x58c   :  { %v974_v19 = vadd.f32 %v970_v54, %v962_v12  ;;  %v3391_v54 = vpack.c.bf16 %v198_v8, %v197_v49 }
 0x58d   :  { %v973_v5 = vadd.f32 %v969_v46, %v961_v55  ;;  %v3148_v30 = vpop.f32.mrb[18].mxu1  ;;  %v980_v27 = vrot.slane %v3925_v44, %v979_v24  ;;  %v199_v46 = vld [vmem:[%s4993_s3 + $0x90] sm:$0xff] }
 0x58e   :  { %v964_v16 = vmul.f32 %v3148_v30, %v4065_v31  ;;  %v940_v56 = vpop.f32.mrb[19].mxu1  ;;  %3393 = vmatprep.subr.msk.bf16.mxu0 %vm3800_vm1, %v3391_v54  ;;  %v3397_v7 = vpack.c.bf16 %v200_v63, %v199_v46 }
 0x58f   :  { %v963_v61 = vmul.f32 %v940_v56, %v4056_v28  ;;  %3157 = vmatprep.mubr.msk.f32.mxu0 %vm39_vm0, %v973_v5  ;;  %v1149_v56 = vsub.s32 2, %v3919_v42 }
 0x590   :  { %v976_v23 = vadd.f32 %v972_v47, %v964_v16  ;;  %3158 = vmatmul.mubr.msk.f32.vlgmr.msra.gmra.mrb[20].mxu0 %vm39_vm0, %v974_v19 }
 0x591   :  { %v975_v20 = vadd.f32 %v971_v3, %v963_v61  ;;  %3396 = vmatpush3.bf16.xpose.msk.msra.mxu0 %vm3800_vm1, %v3391_v54  ;;  %v1157_v61 = vsub.s32 3, %v3919_v42 }
 0x592   :  { %3398 = vmatprep.subr.bf16.mxu0 %v3397_v7 }
 0x593   :  { %3160 = vmatprep.mubr.msk.f32.mxu0 %vm39_vm0, %v975_v20 }
 0x594   :  { %3161 = vmatmul.mubr.msk.f32.gmra.mrb[22].mxu0 %vm39_vm0, %v976_v23  ;;  %v1150_v23 = vrot.slane %v3925_v44, %v1149_v56 }
 0x663   :  { %v3159_v31 = vpop.f32.mrb[20].mxu0 }
 0x664   :  { %v1077_v6 = vadd.f32 %v3159_v31, %v980_v27  ;;  %v1071_v59 = vpop.f32.mrb[21].mxu0 }
 0x665   :  { %v1072_v28 = vadd.f32 %v1071_v59, %v980_v27  ;;  %v1158_v59 = vrot.slane %v3925_v44, %v1157_v61  ;;  %v1165_v44 = vsub.s32 4, %v3919_v42 }
 0x666   :  { %v1091_v57 = vadd.f32 %v1077_v6, %v3902_v35 }
 0x667   :  { %v3162_v52 = vpop.f32.mrb[22].mxu0  ;;  %v1090_v39 = vadd.f32 %v1072_v28, %v3897_v33 }
 0x668   :  { %v1087_v18 = vadd.f32 %v3162_v52, %v980_v27  ;;  %v1081_v10 = vpop.f32.mrb[23].mxu0  ;;  %v1097_v58 = vsel %vm39_vm0, %v1091_v57, 0.0 }
 0x669   :  { %v1082_v41 = vadd.f32 %v1081_v10, %v980_v27  ;;  %1098 = vadd.xlane.f32.xlu0 %v1097_v58  ;;  %v1094_v25 = vsel %vm39_vm0, %v1090_v39, 0.0 }
 0x66a   :  { %1095 = vadd.xlane.f32.xlu1 %v1094_v25  ;;  %v1093_v0 = vadd.f32 %v1087_v18, %v3909_v38 }
 0x66b   :  { %v1092_v48 = vadd.f32 %v1082_v41, %v3913_v40 }
 0x66c   :  { %v1103_v45 = vsel %vm39_vm0, %v1093_v0, 0.0 }
 0x66d   :  { %1104 = vadd.xlane.f32.xlu0 %v1103_v45  ;;  %v1100_v35 = vsel %vm39_vm0, %v1092_v48, 0.0 }
 0x66e   :  { %1101 = vadd.xlane.f32.xlu1 %v1100_v35  ;;  %v4388_v35 = vld [vmem:[%s4994_s4] sm:$0xff] }
 0x6f6   :  { %v1099_v33 = vpop.xlane.xlu0 %1098 }
 0x6f7   :  { %v1108_v53 = vmul.f32 0.03125, %v1099_v33  ;;  %v1096_v60 = vpop.xlane.xlu1 %1095  ;;  %v1166_v33 = vrot.slane %v4388_v35, %v1165_v44 }
 0x6f8   :  { %v1107_v13 = vmul.f32 0.03125, %v1096_v60 }
 0x6f9   :  { %v1112_v22 = vsub.f32 %v1091_v57, %v1108_v53 }
 0x6fa   :  { %v1111_v26 = vsub.f32 %v1090_v39, %v1107_v13  ;;  %v1105_v62 = vpop.xlane.xlu0 %1104 }
 0x6fb   :  { %v1110_v14 = vmul.f32 0.03125, %v1105_v62  ;;  %v1102_v29 = vpop.xlane.xlu1 %1101  ;;  %v1116_v32 = vmul.f32 %v1112_v22, %v1112_v22 }
 0x6fc   :  { %v1109_v21 = vmul.f32 0.03125, %v1102_v29  ;;  %v1115_v38 = vmul.f32 %v1111_v26, %v1111_v26 }
 0x6fd   :  { %v1114_v34 = vsub.f32 %v1093_v0, %v1110_v14  ;;  %v1122_v40 = vsel %vm39_vm0, %v1116_v32, 0.0 }
 0x6fe   :  { %v1113_v51 = vsub.f32 %v1092_v48, %v1109_v21  ;;  %1123 = vadd.xlane.f32.xlu0 %v1122_v40  ;;  %v1119_v17 = vsel %vm39_vm0, %v1115_v38, 0.0  ;;  %v1276_v40 = vsub.s32 5, %v3919_v42 }
 0x6ff   :  { %1120 = vadd.xlane.f32.xlu1 %v1119_v17  ;;  %v1118_v2 = vmul.f32 %v1114_v34, %v1114_v34 }
 0x700   :  { %v1117_v36 = vmul.f32 %v1113_v51, %v1113_v51 }
 0x701   :  { %v1128_v11 = vsel %vm39_vm0, %v1118_v2, 0.0 }
 0x702   :  { %1129 = vadd.xlane.f32.xlu0 %v1128_v11  ;;  %v1125_v37 = vsel %vm39_vm0, %v1117_v36, 0.0 }
 0x703   :  { %1126 = vadd.xlane.f32.xlu1 %v1125_v37 }
 0x78b   :  { %v1124_v1 = vpop.xlane.xlu0 %1123 }
 0x78c   :  { %v1132_v15 = vmul.f32 0.03125, %v1124_v1  ;;  %v1121_v47 = vpop.xlane.xlu1 %1120 }
 0x78d   :  { %v1131_v3 = vmul.f32 0.03125, %v1121_v47 }
 0x78e   :  { %v1136_v50 = vadd.f32 1e-05, %v1132_v15 }
 0x78f   :  { %v1135_v12 = vadd.f32 1e-05, %v1131_v3  ;;  %v1130_v9 = vpop.xlane.xlu0 %1129 }
 0x790   :  { %3590 = vrsqrt.f32 %v1136_v50  ;;  %v1134_v55 = vmul.f32 0.03125, %v1130_v9  ;;  %v1127_v19 = vpop.xlane.xlu1 %1126  ;;  %v1449_v9 = vld [vmem:[%s4993_s3 + $0xa8] sm:$0xff] }
 0x791   :  { %3592 = vrsqrt.f32 %v1135_v12  ;;  %v1133_v5 = vmul.f32 0.03125, %v1127_v19  ;;  %v1448_v12 = vld [vmem:[%s4993_s3 + $0xa0] sm:$0xff] }
 0x792   :  { %v1138_v30 = vadd.f32 1e-05, %v1134_v55  ;;  %v1450_v55 = vld [vmem:[%s4993_s3 + $0xb0] sm:$0xff]  ;;  %v3401_v19 = vpack.c.bf16 %v1449_v9, %v1448_v12 }
 0x793   :  { %v1137_v16 = vadd.f32 1e-05, %v1133_v5  ;;  %v1451_v5 = vld [vmem:[%s4993_s3 + $0xb8] sm:$0xff] }
 0x794   :  { %3594 = vrsqrt.f32 %v1138_v30  ;;  %v3407_v30 = vpack.c.bf16 %v1451_v5, %v1450_v55  ;;  %3403 = vmatprep.subr.msk.bf16.mxu1 %vm3800_vm1, %v3401_v19 }
 0x795   :  { %3596 = vrsqrt.f32 %v1137_v16  ;;  %3406 = vmatpush3.bf16.xpose.msk.msra.mxu1 %vm3800_vm1, %v3401_v19  ;;  %v1452_v16 = vld [vmem:[%s4993_s3 + $0xc0] sm:$0xff] }
 0x796   :  { %3409 = vmatprep.subr.msk.bf16.mxu1 %vm3800_vm1, %v3407_v30 }
 0x79a   :  { %v3591_v20 = vpop.eup %3590 }
 0x79b   :  { %v3593_v27 = vpop.eup %3592  ;;  %v1144_v31 = vmul.f32 %v3591_v20, %v1112_v22 }
 0x79c   :  { %v1143_v6 = vmul.f32 %v3593_v27, %v1111_v26  ;;  %v1454_v27 = vld [vmem:[%s4993_s3 + $0xd0] sm:$0xff] }
 0x79d   :  { %v1152_v28 = vmul.f32 %v1150_v23, %v1144_v31  ;;  %3412 = vmatpush3.bf16.xpose.msk.msra.mxu1 %vm3800_vm1, %v3407_v30  ;;  %v1455_v31 = vld [vmem:[%s4993_s3 + $0xd8] sm:$0xff] }
 0x79e   :  { %v3595_v57 = vpop.eup %3594  ;;  %v1151_v52 = vmul.f32 %v1150_v23, %v1143_v6  ;;  %v3419_v6 = vpack.c.bf16 %v1455_v31, %v1454_v27 }
 0x79f   :  { %v3597_v39 = vpop.eup %3596  ;;  %v1146_v18 = vmul.f32 %v3595_v57, %v1114_v34  ;;  %v1160_v41 = vadd.f32 %v1158_v59, %v1152_v28 }
 0x7a0   :  { %v1159_v10 = vadd.f32 %v1158_v59, %v1151_v52  ;;  %v1145_v58 = vmul.f32 %v3597_v39, %v1113_v51  ;;  %v1277_v51 = vrot.slane %v4388_v35, %v1276_v40 }
 0x7a1   :  { %v1154_v25 = vmul.f32 %v1150_v23, %v1146_v18 }
 0x7a2   :  { %3167 = vmatprep.mubr.msk.f32.mxu0 %vm39_vm0, %v1159_v10  ;;  %v1153_v0 = vmul.f32 %v1150_v23, %v1145_v58  ;;  %v1453_v23 = vld [vmem:[%s4993_s3 + $0xc8] sm:$0xff] }
 0x7a3   :  { %3168 = vmatmul.mubr.msk.f32.vlgmr.msra.gmra.mrb[24].mxu0 %vm39_vm0, %v1160_v41  ;;  %v1162_v45 = vadd.f32 %v1158_v59, %v1154_v25  ;;  %v3413_v20 = vpack.c.bf16 %v1453_v23, %v1452_v16 }
 0x7a4   :  { %v1161_v48 = vadd.f32 %v1158_v59, %v1153_v0  ;;  %3400 = vmatpush3.bf16.msra.mxu0 %v3397_v7 }
 0x7a5   :  { %3415 = vmatprep.subr.msk.bf16.mxu1 %vm3800_vm1, %v3413_v20 }
 0x7a6   :  { %3170 = vmatprep.mubr.msk.f32.mxu0 %vm39_vm0, %v1161_v48  ;;  %3418 = vmatpush3.bf16.xpose.msk.msra.mxu1 %vm3800_vm1, %v3413_v20 }
 0x7a7   :  { %3171 = vmatmul.mubr.msk.f32.gmra.mrb[26].mxu0 %vm39_vm0, %v1162_v45  ;;  %3421 = vmatprep.subr.msk.bf16.mxu1 %vm3800_vm1, %v3419_v6 }
 0x7ae   :  { %3424 = vmatpush3.bf16.xpose.msk.msra.mxu1 %vm3800_vm1, %v3419_v6 }
 0x876   :  { %v3169_v53 = vpop.f32.mrb[24].mxu0 }
 0x877   :  { %v1257_v60 = vadd.f32 %v3169_v53, %v1166_v33  ;;  %v1251_v13 = vpop.f32.mrb[25].mxu0 }
 0x878   :  { %v1252_v22 = vadd.f32 %v1251_v13, %v1166_v33 }
 0x879   :  { %v1271_v14 = vmax.f32 %v1257_v60, 0.0 }
 0x87a   :  { %v1270_v26 = vmax.f32 %v1252_v22, 0.0  ;;  %v3172_v62 = vpop.f32.mrb[26].mxu0 }
 0x87b   :  { %v1267_v29 = vadd.f32 %v3172_v62, %v1166_v33  ;;  %v1261_v32 = vpop.f32.mrb[27].mxu0 }
 0x87c   :  { %v1262_v21 = vadd.f32 %v1261_v32, %v1166_v33  ;;  %3177 = vmatprep.mubr.msk.f32.mxu0 %vm1278_vm2, %v1270_v26 }
 0x87d   :  { %3178 = vmatmul.mubr.msk.f32.vlgmr.msra.gmra.mrb[28].mxu0 %vm1278_vm2, %v1271_v14  ;;  %v1273_v34 = vmax.f32 %v1267_v29, 0.0  ;;  %v1456_v14 = vld [vmem:[%s4993_s3 + $0xe0] sm:$0xff]  ;;  %v1457_v29 = vld [vmem:[%s4993_s3 + $0xe8] sm:$0xff] }
 0x87e   :  { %v1272_v38 = vmax.f32 %v1262_v21, 0.0  ;;  %v3425_v32 = vpack.c.bf16 %v1457_v29, %v1456_v14  ;;  %v1458_v21 = vld [vmem:[%s4993_s3 + $0xf0] sm:$0xff] }
 0x880   :  { %3180 = vmatprep.mubr.msk.f32.mxu0 %vm1278_vm2, %v1272_v38  ;;  %3427 = vmatprep.subr.msk.bf16.mxu1 %vm3800_vm1, %v3425_v32  ;;  %v1459_v38 = vld [vmem:[%s4993_s3 + $0xf8] sm:$0xff] }
 0x881   :  { %3181 = vmatmul.mubr.msk.f32.gmra.mrb[30].mxu0 %vm1278_vm2, %v1273_v34  ;;  %3430 = vmatpush3.bf16.xpose.msk.msra.mxu1 %vm3800_vm1, %v3425_v32  ;;  %v3431_v34 = vpack.c.bf16 %v1459_v38, %v1458_v21  ;;  %v4530_v21 = vld [vmem:[%s4995_s5 + $0x8] sm:$0xff] }
 0x883   :  { %3433 = vmatprep.subr.msk.bf16.mxu1 %vm3800_vm1, %v3431_v34 }
 0x889   :  { %3436 = vmatpush3.bf16.xpose.msk.msra.mxu1 %vm3800_vm1, %v3431_v34  ;;  %v4537_v34 = vld [vmem:[%s4995_s5 + $0x10] sm:$0xff] }
 0x950   :  { %v3179_v17 = vpop.f32.mrb[28].mxu0 }
 0x951   :  { %v1363_v2 = vadd.f32 %v3179_v17, %v1277_v51  ;;  %v1357_v36 = vpop.f32.mrb[29].mxu0 }
 0x952   :  { %v1358_v11 = vadd.f32 %v1357_v36, %v1277_v51 }
 0x953   :  { %v1377_v37 = vadd.f32 %v1363_v2, %v1160_v41 }
 0x954   :  { %v3182_v49 = vpop.f32.mrb[30].mxu0  ;;  %v1376_v8 = vadd.f32 %v1358_v11, %v1159_v10 }
 0x955   :  { %v1373_v54 = vadd.f32 %v3182_v49, %v1277_v51  ;;  %v1367_v46 = vpop.f32.mrb[31].mxu0  ;;  %v1383_v63 = vsel %vm39_vm0, %v1377_v37, 0.0 }
 0x956   :  { %v1368_v7 = vadd.f32 %v1367_v46, %v1277_v51  ;;  %1384 = vadd.xlane.f32.xlu0 %v1383_v63  ;;  %v1380_v1 = vsel %vm39_vm0, %v1376_v8, 0.0 }
 0x957   :  { %1381 = vadd.xlane.f32.xlu1 %v1380_v1  ;;  %v1379_v15 = vadd.f32 %v1373_v54, %v1162_v45  ;;  %v4999_v1 = vsub.s32 6, %v3919_v42 }
 0x958   :  { %v1378_v47 = vadd.f32 %v1368_v7, %v1161_v48 }
 0x959   :  { %v1389_v3 = vsel %vm39_vm0, %v1379_v15, 0.0 }
 0x95a   :  { %1390 = vadd.xlane.f32.xlu0 %v1389_v3  ;;  %v1386_v50 = vsel %vm39_vm0, %v1378_v47, 0.0 }
 0x95b   :  { %1387 = vadd.xlane.f32.xlu1 %v1386_v50 }
 0x9e3   :  { %v1385_v59 = vpop.xlane.xlu0 %1384 }
 0x9e4   :  { %v1393_v28 = vmul.f32 0.03125, %v1385_v59  ;;  %v1382_v57 = vpop.xlane.xlu1 %1381 }
 0x9e5   :  { %v1392_v52 = vmul.f32 0.03125, %v1382_v57  ;;  %v4496_v57 = vld [vmem:[%s4994_s4 + $0x8] sm:$0xff] }
 0x9e6   :  { %v1397_v39 = vsub.f32 %v1377_v37, %v1393_v28 }
 0x9e7   :  { %v1396_v18 = vsub.f32 %v1376_v8, %v1392_v52  ;;  %v1391_v10 = vpop.xlane.xlu0 %1390  ;;  %v1472_v52 = vrot.slane %v4496_v57, %v204_v43 }
 0x9e8   :  { %v1395_v58 = vmul.f32 0.03125, %v1391_v10  ;;  %v1388_v41 = vpop.xlane.xlu1 %1387  ;;  %v1401_v25 = vmul.f32 %v1397_v39, %v1397_v39 }
 0x9e9   :  { %v1394_v0 = vmul.f32 0.03125, %v1388_v41  ;;  %v1400_v48 = vmul.f32 %v1396_v18, %v1396_v18 }
 0x9ea   :  { %v1399_v45 = vsub.f32 %v1379_v15, %v1395_v58  ;;  %v1407_v33 = vsel %vm39_vm0, %v1401_v25, 0.0  ;;  %v4998_v15 = vsub.s32 7, %v3919_v42 }
 0x9eb   :  { %v1398_v53 = vsub.f32 %v1378_v47, %v1394_v0  ;;  %1408 = vadd.xlane.f32.xlu0 %v1407_v33  ;;  %v1404_v60 = vsel %vm39_vm0, %v1400_v48, 0.0  ;;  %v1435_v47 = vrot.slane %v4388_v35, %v4999_v1  ;;  %v4509_v0 = vld [vmem:[%s4995_s5] sm:$0xff] }
 0x9ec   :  { %1405 = vadd.xlane.f32.xlu1 %v1404_v60  ;;  %v1403_v13 = vmul.f32 %v1399_v45, %v1399_v45  ;;  %v1443_v55 = vrot.slane %v4388_v35, %v4998_v15 }
 0x9ed   :  { %v1402_v22 = vmul.f32 %v1398_v53, %v1398_v53 }
 0x9ee   :  { %v1413_v26 = vsel %vm39_vm0, %v1403_v13, 0.0 }
 0x9ef   :  { %1414 = vadd.xlane.f32.xlu0 %v1413_v26  ;;  %v1410_v62 = vsel %vm39_vm0, %v1402_v22, 0.0 }
 0x9f0   :  { %1411 = vadd.xlane.f32.xlu1 %v1410_v62 }
 0xa78   :  { %v1409_v51 = vpop.xlane.xlu0 %1408 }
 0xa79   :  { %v1417_v17 = vmul.f32 0.03125, %v1409_v51  ;;  %v1406_v2 = vpop.xlane.xlu1 %1405 }
 0xa7a   :  { %v1416_v36 = vmul.f32 0.03125, %v1406_v2 }
 0xa7b   :  { %v1421_v11 = vadd.f32 1e-05, %v1417_v17  ;;  %v4545_v17 = vld [vmem:[%s4995_s5 + $0x18] sm:$0xff] }
 0xa7c   :  { %v1420_v37 = vadd.f32 1e-05, %v1416_v36  ;;  %v1415_v49 = vpop.xlane.xlu0 %1414  ;;  %v4551_v36 = vld [vmem:[%s4995_s5 + $0x20] sm:$0xff] }
 0xa7d   :  { %3598 = vrsqrt.f32 %v1421_v11  ;;  %v1419_v8 = vmul.f32 0.03125, %v1415_v49  ;;  %v1412_v54 = vpop.xlane.xlu1 %1411 }
 0xa7e   :  { %3600 = vrsqrt.f32 %v1420_v37  ;;  %v1418_v46 = vmul.f32 0.03125, %v1412_v54  ;;  %v4559_v37 = vld [vmem:[%s4995_s5 + $0x28] sm:$0xff] }
 0xa7f   :  { %v1423_v63 = vadd.f32 1e-05, %v1419_v8  ;;  %v4566_v8 = vld [vmem:[%s4995_s5 + $0x30] sm:$0xff] }
 0xa80   :  { %v1422_v7 = vadd.f32 1e-05, %v1418_v46  ;;  %v4574_v46 = vld [vmem:[%s4995_s5 + $0x38] sm:$0xff] }
 0xa81   :  { %3602 = vrsqrt.f32 %v1423_v63 }
 0xa82   :  { %3604 = vrsqrt.f32 %v1422_v7  ;;  %v4580_v7 = vld [vmem:[%s4995_s5 + $0x40] sm:$0xff] }
 0xa87   :  { %v3599_v3 = vpop.eup %3598 }
 0xa88   :  { %v3601_v50 = vpop.eup %3600  ;;  %v1429_v12 = vmul.f32 %v3599_v3, %v1397_v39  ;;  %v4588_v3 = vld [vmem:[%s4995_s5 + $0x48] sm:$0xff] }
 0xa89   :  { %v1428_v9 = vmul.f32 %v3601_v50, %v1396_v18 }
 0xa8a   :  { %v1437_v19 = vmul.f32 %v1435_v47, %v1429_v12  ;;  %v4595_v12 = vld [vmem:[%s4995_s5 + $0x50] sm:$0xff] }
 0xa8b   :  { %v3603_v5 = vpop.eup %3602  ;;  %v1436_v30 = vmul.f32 %v1435_v47, %v1428_v9 }
 0xa8c   :  { %v3605_v16 = vpop.eup %3604  ;;  %v1431_v23 = vmul.f32 %v3603_v5, %v1399_v45  ;;  %v4479_v31 = vadd.f32 %v1443_v55, %v1437_v19  ;;  %v4609_v5 = vld [vmem:[%s4995_s5 + $0x60] sm:$0xff] }
 0xa8d   :  { %v4477_v20 = vadd.f32 %v1443_v55, %v1436_v30  ;;  %v1430_v27 = vmul.f32 %v3605_v16, %v1398_v53  ;;  %v4617_v16 = vld [vmem:[%s4995_s5 + $0x68] sm:$0xff] }
 0xa8e   :  { %v1439_v6 = vmul.f32 %v1435_v47, %v1431_v23 }
 0xa8f   :  { %3207 = vmatprep.mubr.msk.f32.mxu1 %vm39_vm0, %v4477_v20  ;;  %v1438_v59 = vmul.f32 %v1435_v47, %v1430_v27  ;;  %v4624_v27 = vld [vmem:[%s4995_s5 + $0x70] sm:$0xff] }
 0xa90   :  { %3208 = vmatmul.mubr.msk.f32.vlgmr.msra.gmra.mrb[20].mxu1 %vm39_vm0, %v4479_v31  ;;  %v4487_v35 = vadd.f32 %v1443_v55, %v1439_v6 }
 0xa91   :  { %v4485_v28 = vadd.f32 %v1443_v55, %v1438_v59  ;;  %v4603_v55 = vld [vmem:[%s4995_s5 + $0x58] sm:$0xff] }
 0xa92   :  { %v4632_v59 = vld [vmem:[%s4995_s5 + $0x78] sm:$0xff] }
 0xa93   :  { %3210 = vmatprep.mubr.msk.f32.mxu1 %vm39_vm0, %v4485_v28 }
 0xa94   :  { %3211 = vmatmul.mubr.msk.f32.gmra.mrb[22].mxu1 %vm39_vm0, %v4487_v35 }
 0xb63   :  { %v3209_v39 = vpop.f32.mrb[20].mxu1 }
 0xb64   :  { %v4501_v18 = vadd.f32 %v3209_v39, %v1472_v52  ;;  %v1587_v10 = vpop.f32.mrb[21].mxu1 }
 0xb65   :  { %v1588_v58 = vadd.f32 %v1587_v10, %v1472_v52 }
 0xb66   :  { %v1607_v38 = vmul.f32 %v4530_v21, %v4501_v18  ;;  %v1611_v49 = vmul.f32 %v4559_v37, %v4501_v18  ;;  %v1615_v50 = vmul.f32 %v4588_v3, %v4501_v18  ;;  %v1619_v23 = vmul.f32 %v4617_v16, %v4501_v18 }
 0xb67   :  { %v3212_v41 = vpop.f32.mrb[22].mxu1  ;;  %v4504_v25 = vpack.i.bf16 %v4501_v18, %v1588_v58  ;;  %v1606_v48 = vmul.f32 %v4509_v0, %v1588_v58  ;;  %v1610_v11 = vmul.f32 %v4551_v36, %v1588_v58  ;;  %v1614_v47 = vmul.f32 %v4580_v7, %v1588_v58  ;;  %v3703_v18 = vld [vmem:[%s4996_s6 + $0x8] sm:$0xff] }
 0xb68   :  { %v1603_v45 = vadd.f32 %v3212_v41, %v1472_v52  ;;  %v1597_v33 = vpop.f32.mrb[23].mxu1  ;;  %v1618_v30 = vmul.f32 %v4609_v5, %v1588_v58  ;;  %v3704_v41 = vld [vmem:[%s4996_s6] sm:$0xff] }
 0xb69   :  { %v1598_v53 = vadd.f32 %v1597_v33, %v1472_v52  ;;  %3507 = vrot.lane.b32.xlu1 %v4504_v25, %s3744_s26  ;;  %3221 = vmatprep.mubr.msk.f32.mxu0 %vm39_vm0, %v1606_v48 }
 0xb6a   :  { %v1609_v2 = vmul.f32 %v4545_v17, %v1603_v45  ;;  %v1613_v63 = vmul.f32 %v4574_v46, %v1603_v45  ;;  %v1617_v19 = vmul.f32 %v4603_v55, %v1603_v45  ;;  %v1621_v52 = vmul.f32 %v4632_v59, %v1603_v45 }
 0xb6b   :  { %v4515_v43 = vpack.i.bf16 %v1603_v45, %v1598_v53  ;;  %v1608_v51 = vmul.f32 %v4537_v34, %v1598_v53  ;;  %v1612_v54 = vmul.f32 %v4566_v8, %v1598_v53  ;;  %v1616_v9 = vmul.f32 %v4595_v12, %v1598_v53 }
 0xb6c   :  { %v1620_v6 = vmul.f32 %v4624_v27, %v1598_v53 }
 0xb6d   :  { %3512 = vrot.lane.b32.xlu0 %v4515_v43, %s3744_s26 }
 0xbdb   :  { %v3508_v60 = vpop.permute.xlu1 %3507 }
 0xbdc   :  { %v3510_v13 = vunpack.i.h.bf16 %v3508_v60  ;;  %v3509_v22 = vunpack.i.l.bf16 %v3508_v60  ;;  %v3705_v60 = vld [vmem:[%s4996_s6 + $0x18] sm:$0xff] }
 0xbde   :  { %v3437_v26 = vpack.c.bf16 %v3510_v13, %v3509_v22 }
 0xbdf   :  { %v3513_v62 = vpop.permute.xlu0 %3512 }
 0xbe0   :  { %v3515_v14 = vunpack.i.h.bf16 %v3513_v62  ;;  %v3514_v29 = vunpack.i.l.bf16 %v3513_v62  ;;  %3439 = vmatprep.subr.msk.bf16.mxu0 %vm3800_vm1, %v3437_v26 }
 0xbe1   :  { %3442 = vmatpush3.bf16.xpose.msk.msra.mxu0 %vm3800_vm1, %v3437_v26  ;;  %v3706_v26 = vld [vmem:[%s4996_s6 + $0x10] sm:$0xff] }
 0xbe2   :  { %v3443_v32 = vpack.c.bf16 %v3515_v14, %v3514_v29 }
 0xbe4   :  { %3445 = vmatprep.subr.msk.bf16.mxu0 %vm3800_vm1, %v3443_v32 }
 0xbe9   :  { %3448 = vmatpush3.bf16.xpose.msk.msra.mxu0 %vm3800_vm1, %v3443_v32 }
 0xbf0   :  { %3222 = vmatmul.mubr.msk.f32.vlgmr.msra.gmra.mrb[32].mxu0 %vm39_vm0, %v1607_v38  ;;  %v3707_v38 = vld [vmem:[%s4996_s6 + $0x28] sm:$0xff] }
 0xbf1   :  { %3224 = vmatprep.mubr.msk.f32.mxu0 %vm39_vm0, %v1608_v51 }
 0xbf4   :  { %3225 = vmatmul.mubr.msk.f32.gmra.mrb[34].mxu0 %vm39_vm0, %v1609_v2 }
 0xbf5   :  { %3227 = vmatprep.mubr.msk.f32.mxu0 %vm39_vm0, %v1610_v11  ;;  %v3708_v11 = vld [vmem:[%s4996_s6 + $0x20] sm:$0xff] }
 0xbf8   :  { %3228 = vmatmul.mubr.msk.f32.gmra.mrb[36].mxu0 %vm39_vm0, %v1611_v49 }
 0xbf9   :  { %3230 = vmatprep.mubr.msk.f32.mxu0 %vm39_vm0, %v1612_v54 }
 0xbfc   :  { %3231 = vmatmul.mubr.msk.f32.gmra.mrb[38].mxu0 %vm39_vm0, %v1613_v63 }
 0xbfd   :  { %3233 = vmatprep.mubr.msk.f32.mxu0 %vm39_vm0, %v1614_v47 }
 0xc00   :  { %3234 = vmatmul.mubr.msk.f32.gmra.mrb[40].mxu0 %vm39_vm0, %v1615_v50  ;;  %v3709_v50 = vld [vmem:[%s4996_s6 + $0x38] sm:$0xff] }
 0xc01   :  { %3236 = vmatprep.mubr.msk.f32.mxu0 %vm39_vm0, %v1616_v9 }
 0xc04   :  { %3237 = vmatmul.mubr.msk.f32.gmra.mrb[42].mxu0 %vm39_vm0, %v1617_v19 }
 0xc05   :  { %3239 = vmatprep.mubr.msk.f32.mxu0 %vm39_vm0, %v1618_v30  ;;  %v3710_v30 = vld [vmem:[%s4996_s6 + $0x30] sm:$0xff] }
 0xc08   :  { %3240 = vmatmul.mubr.msk.f32.gmra.mrb[44].mxu0 %vm39_vm0, %v1619_v23 }
 0xc09   :  { %3242 = vmatprep.mubr.msk.f32.mxu0 %vm39_vm0, %v1620_v6 }
 0xc0c   :  { %3243 = vmatmul.mubr.msk.f32.gmra.mrb[46].mxu0 %vm39_vm0, %v1621_v52 }
 0xcc3   :  { %v3223_v39 = vpop.f32.mrb[32].mxu0 }
 0xcc4   :  { %v4639_v10 = vadd.f32 %v3703_v18, %v3223_v39  ;;  %v1756_v58 = vpop.f32.mrb[33].mxu0  ;;  %v3711_v18 = vld [vmem:[%s4996_s6 + $0x48] sm:$0xff] }
 0xcc5   :  { %v4644_v48 = vadd.f32 %v3704_v41, %v1756_v58 }
 0xcc6   :  { %v1838_v33 = vsel %vm39_vm0, %v4639_v10, -inf }
 0xcc7   :  { %1839 = vmax.xlane.f32.xlu0 %v1838_v33  ;;  %v3226_v45 = vpop.f32.mrb[34].mxu0  ;;  %v1835_v53 = vsel %vm39_vm0, %v4644_v48, -inf  ;;  %v3712_v33 = vld [vmem:[%s4996_s6 + $0x40] sm:$0xff] }
 0xcc8   :  { %v4653_v13 = vadd.f32 %v3705_v60, %v3226_v45  ;;  %v1766_v22 = vpop.f32.mrb[35].mxu0  ;;  %1836 = vmax.xlane.f32.xlu1 %v1835_v53 }
 0xcc9   :  { %v4658_v62 = vadd.f32 %v3706_v26, %v1766_v22  ;;  %v3713_v26 = vld [vmem:[%s4996_s6 + $0x58] sm:$0xff] }
 0xcca   :  { %v1844_v14 = vsel %vm39_vm0, %v4653_v13, -inf }
 0xccb   :  { %1845 = vmax.xlane.f32.xlu0 %v1844_v14  ;;  %v3229_v29 = vpop.f32.mrb[36].mxu0  ;;  %v1841_v32 = vsel %vm39_vm0, %v4658_v62, -inf }
 0xccc   :  { %v4667_v51 = vadd.f32 %v3707_v38, %v3229_v29  ;;  %v1776_v2 = vpop.f32.mrb[37].mxu0  ;;  %1842 = vmax.xlane.f32.xlu1 %v1841_v32  ;;  %v3714_v32 = vld [vmem:[%s4996_s6 + $0x50] sm:$0xff] }
 0xccd   :  { %v4672_v49 = vadd.f32 %v3708_v11, %v1776_v2 }
 0xcce   :  { %v1850_v54 = vsel %vm39_vm0, %v4667_v51, -inf }
 0xccf   :  { %1851 = vmax.xlane.f32.xlu0 %v1850_v54  ;;  %v3232_v63 = vpop.f32.mrb[38].mxu0  ;;  %v1847_v47 = vsel %vm39_vm0, %v4672_v49, -inf }
 0xcd0   :  { %v4681_v9 = vadd.f32 %v3709_v50, %v3232_v63  ;;  %v1786_v19 = vpop.f32.mrb[39].mxu0  ;;  %1848 = vmax.xlane.f32.xlu1 %v1847_v47  ;;  %v3715_v63 = vld [vmem:[%s4996_s6 + $0x68] sm:$0xff] }
 0xcd1   :  { %v4686_v23 = vadd.f32 %v3710_v30, %v1786_v19  ;;  %v3716_v19 = vld [vmem:[%s4996_s6 + $0x60] sm:$0xff] }
 0xcd2   :  { %v1856_v6 = vsel %vm39_vm0, %v4681_v9, -inf }
 0xcd3   :  { %1857 = vmax.xlane.f32.xlu0 %v1856_v6  ;;  %v3235_v52 = vpop.f32.mrb[40].mxu0  ;;  %v1853_v39 = vsel %vm39_vm0, %v4686_v23, -inf }
 0xcd4   :  { %v4695_v58 = vadd.f32 %v3711_v18, %v3235_v52  ;;  %v1796_v41 = vpop.f32.mrb[41].mxu0  ;;  %1854 = vmax.xlane.f32.xlu1 %v1853_v39  ;;  %v3717_v18 = vld [vmem:[%s4996_s6 + $0x78] sm:$0xff] }
 0xcd5   :  { %v4700_v45 = vadd.f32 %v3712_v33, %v1796_v41 }
 0xcd6   :  { %v1862_v53 = vsel %vm39_vm0, %v4695_v58, -inf }
 0xcd7   :  { %1863 = vmax.xlane.f32.xlu0 %v1862_v53  ;;  %v3238_v60 = vpop.f32.mrb[42].mxu0  ;;  %v1859_v22 = vsel %vm39_vm0, %v4700_v45, -inf  ;;  %v3718_v53 = vld [vmem:[%s4996_s6 + $0x70] sm:$0xff] }
 0xcd8   :  { %v4709_v14 = vadd.f32 %v3713_v26, %v3238_v60  ;;  %v1806_v29 = vpop.f32.mrb[43].mxu0  ;;  %1860 = vmax.xlane.f32.xlu1 %v1859_v22 }
 0xcd9   :  { %v4714_v38 = vadd.f32 %v3714_v32, %v1806_v29 }
 0xcda   :  { %v1868_v2 = vsel %vm39_vm0, %v4709_v14, -inf }
 0xcdb   :  { %1869 = vmax.xlane.f32.xlu0 %v1868_v2  ;;  %v3241_v11 = vpop.f32.mrb[44].mxu0  ;;  %v1865_v54 = vsel %vm39_vm0, %v4714_v38, -inf }
 0xcdc   :  { %v4723_v47 = vadd.f32 %v3715_v63, %v3241_v11  ;;  %v1816_v50 = vpop.f32.mrb[45].mxu0  ;;  %1866 = vmax.xlane.f32.xlu1 %v1865_v54 }
 0xcdd   :  { %v4728_v30 = vadd.f32 %v3716_v19, %v1816_v50 }
 0xcde   :  { %v1874_v6 = vsel %vm39_vm0, %v4723_v47, -inf }
 0xcdf   :  { %1875 = vmax.xlane.f32.xlu0 %v1874_v6  ;;  %v3244_v52 = vpop.f32.mrb[46].mxu0  ;;  %v1871_v39 = vsel %vm39_vm0, %v4728_v30, -inf }
 0xce0   :  { %v4737_v41 = vadd.f32 %v3717_v18, %v3244_v52  ;;  %v1826_v33 = vpop.f32.mrb[47].mxu0  ;;  %1872 = vmax.xlane.f32.xlu1 %v1871_v39 }
 0xce1   :  { %v4742_v60 = vadd.f32 %v3718_v53, %v1826_v33 }
 0xce2   :  { %v1880_v22 = vsel %vm39_vm0, %v4737_v41, -inf }
 0xce3   :  { %1881 = vmax.xlane.f32.xlu0 %v1880_v22  ;;  %v1877_v26 = vsel %vm39_vm0, %v4742_v60, -inf }
 0xce4   :  { %1878 = vmax.xlane.f32.xlu1 %v1877_v26 }
 0xd54   :  { %v1840_v29 = vpop.xlane.xlu0 %1839 }
 0xd55   :  { %v1884_v32 = vsub.f32 %v4639_v10, %v1840_v29  ;;  %v1837_v2 = vpop.xlane.xlu1 %1836 }
 0xd56   :  { %v1883_v11 = vsub.f32 %v4644_v48, %v1837_v2 }
 0xd57   :  { %v1901_v54 = vmul.f32 1.442695, %v1884_v32 }
 0xd58   :  { %v1899_v63 = vmul.f32 1.442695, %v1883_v11  ;;  %v1846_v50 = vpop.xlane.xlu0 %1845 }
 0xd59   :  { %3606 = vpow2.f32 %v1901_v54  ;;  %v1886_v19 = vsub.f32 %v4653_v13, %v1846_v50  ;;  %v1843_v6 = vpop.xlane.xlu1 %1842 }
 0xd5a   :  { %3608 = vpow2.f32 %v1899_v63  ;;  %v1885_v52 = vsub.f32 %v4658_v62, %v1843_v6 }
 0xd5b   :  { %v1905_v39 = vmul.f32 1.442695, %v1886_v19 }
 0xd5c   :  { %v1903_v18 = vmul.f32 1.442695, %v1885_v52  ;;  %v1852_v33 = vpop.xlane.xlu0 %1851 }
 0xd5d   :  { %3610 = vpow2.f32 %v1905_v39  ;;  %v1888_v53 = vsub.f32 %v4667_v51, %v1852_v33  ;;  %v1849_v10 = vpop.xlane.xlu1 %1848 }
 0xd5e   :  { %3612 = vpow2.f32 %v1903_v18  ;;  %v1887_v48 = vsub.f32 %v4672_v49, %v1849_v10 }
 0xd5f   :  { %v1909_v22 = vmul.f32 1.442695, %v1888_v53 }
 0xd60   :  { %v1907_v26 = vmul.f32 1.442695, %v1887_v48  ;;  %v1858_v29 = vpop.xlane.xlu0 %1857 }
 0xd61   :  { %3614 = vpow2.f32 %v1909_v22  ;;  %v1890_v13 = vsub.f32 %v4681_v9, %v1858_v29  ;;  %v1855_v32 = vpop.xlane.xlu1 %1854 }
 0xd62   :  { %3616 = vpow2.f32 %v1907_v26  ;;  %v1889_v62 = vsub.f32 %v4686_v23, %v1855_v32 }
 0xd63   :  { %v4756_v2 = vpop.eup %3606  ;;  %v1913_v11 = vmul.f32 1.442695, %v1890_v13 }
 0xd64   :  { %v4758_v54 = vpop.eup %3608  ;;  %v1911_v51 = vmul.f32 1.442695, %v1889_v62  ;;  %v1864_v63 = vpop.xlane.xlu0 %1863  ;;  %v1934_v49 = vsel %vm39_vm0, %v4756_v2, 0.0 }
 0xd65   :  { %3618 = vpow2.f32 %v1913_v11  ;;  %v1892_v50 = vsub.f32 %v4695_v58, %v1864_v63  ;;  %1935 = vadd.xlane.f32.xlu0 %v1934_v49  ;;  %v1861_v19 = vpop.xlane.xlu1 %1860  ;;  %v1931_v9 = vsel %vm39_vm0, %v4758_v54, 0.0 }
 0xd66   :  { %3620 = vpow2.f32 %v1911_v51  ;;  %v1891_v23 = vsub.f32 %v4700_v45, %v1861_v19  ;;  %1932 = vadd.xlane.f32.xlu1 %v1931_v9 }
 0xd67   :  { %v4766_v6 = vpop.eup %3610  ;;  %v1917_v52 = vmul.f32 1.442695, %v1892_v50 }
 0xd68   :  { %v4768_v39 = vpop.eup %3612  ;;  %v1915_v18 = vmul.f32 1.442695, %v1891_v23  ;;  %v1870_v33 = vpop.xlane.xlu0 %1869  ;;  %v1940_v53 = vsel %vm39_vm0, %v4766_v6, 0.0 }
 0xd69   :  { %3622 = vpow2.f32 %v1917_v52  ;;  %v1894_v58 = vsub.f32 %v4709_v14, %v1870_v33  ;;  %1941 = vadd.xlane.f32.xlu0 %v1940_v53  ;;  %v1867_v10 = vpop.xlane.xlu1 %1866  ;;  %v1937_v48 = vsel %vm39_vm0, %v4768_v39, 0.0 }
 0xd6a   :  { %3624 = vpow2.f32 %v1915_v18  ;;  %v1893_v45 = vsub.f32 %v4714_v38, %v1867_v10  ;;  %1938 = vadd.xlane.f32.xlu1 %v1937_v48 }
 0xd6b   :  { %v4776_v22 = vpop.eup %3614  ;;  %v1921_v26 = vmul.f32 1.442695, %v1894_v58 }
 0xd6c   :  { %v4778_v29 = vpop.eup %3616  ;;  %v1919_v13 = vmul.f32 1.442695, %v1893_v45  ;;  %v1946_v32 = vsel %vm39_vm0, %v4776_v22, 0.0  ;;  %v1876_v53 = vpop.xlane.xlu0 %1875 }
 0xd6d   :  { %3626 = vpow2.f32 %v1921_v26  ;;  %1947 = vadd.xlane.f32.xlu0 %v1946_v32  ;;  %v1943_v14 = vsel %vm39_vm0, %v4778_v29, 0.0  ;;  %v1873_v33 = vpop.xlane.xlu1 %1872 }
 0xd6e   :  { %1944 = vadd.xlane.f32.xlu1 %v1943_v14  ;;  %3628 = vpow2.f32 %v1919_v13  ;;  %v1895_v58 = vsub.f32 %v4728_v30, %v1873_v33  ;;  %v1896_v13 = vsub.f32 %v4723_v47, %v1876_v53 }
 0xd6f   :  { %v4784_v62 = vpop.eup %3618 }
 0xd70   :  { %v4786_v38 = vpop.eup %3620  ;;  %v1952_v11 = vsel %vm39_vm0, %v4784_v62, 0.0  ;;  %v1923_v48 = vmul.f32 1.442695, %v1895_v58  ;;  %v1882_v26 = vpop.xlane.xlu0 %1881 }
 0xd71   :  { %1953 = vadd.xlane.f32.xlu0 %v1952_v11  ;;  %v1949_v51 = vsel %vm39_vm0, %v4786_v38, 0.0  ;;  %v1879_v10 = vpop.xlane.xlu1 %1878  ;;  %v1898_v32 = vsub.f32 %v4737_v41, %v1882_v26  ;;  %v1925_v11 = vmul.f32 1.442695, %v1896_v13 }
 0xd72   :  { %1950 = vadd.xlane.f32.xlu1 %v1949_v51  ;;  %v1897_v45 = vsub.f32 %v4742_v60, %v1879_v10  ;;  %3630 = vpow2.f32 %v1923_v48 }
 0xd73   :  { %v4792_v63 = vpop.eup %3622 }
 0xd74   :  { %v4794_v49 = vpop.eup %3624  ;;  %v1958_v50 = vsel %vm39_vm0, %v4792_v63, 0.0  ;;  %v1927_v14 = vmul.f32 1.442695, %v1897_v45 }
 0xd75   :  { %1959 = vadd.xlane.f32.xlu0 %v1958_v50  ;;  %v1955_v19 = vsel %vm39_vm0, %v4794_v49, 0.0 }
 0xd76   :  { %1956 = vadd.xlane.f32.xlu1 %v1955_v19  ;;  %3632 = vpow2.f32 %v1927_v14 }
 0xd77   :  { %v4800_v9 = vpop.eup %3626  ;;  %3634 = vpow2.f32 %v1925_v11 }
 0xd78   :  { %v1964_v23 = vsel %vm39_vm0, %v4800_v9, 0.0  ;;  %v4804_v52 = vpop.eup %3628 }
 0xd79   :  { %1965 = vadd.xlane.f32.xlu0 %v1964_v23  ;;  %v1961_v18 = vsel %vm39_vm0, %v4804_v52, 0.0 }
 0xd7d   :  { %1962 = vadd.xlane.f32.xlu0 %v1961_v18 }
 0xd87   :  { %3517 = vrot.lane.b32.xlu1 %v4504_v25, %s3745_s15  ;;  %v1929_v25 = vmul.f32 1.442695, %v1898_v32 }
 0xd89   :  { %3636 = vpow2.f32 %v1929_v25 }
 0xd93   :  { %3522 = vrot.lane.b32.xlu0 %v4515_v43, %s3745_s15  ;;  %v4816_v43 = vpop.eup %3630 }
 0xd94   :  { %v1967_v30 = vsel %vm39_vm0, %v4816_v43, 0.0  ;;  %v4820_v51 = vpop.eup %3632 }
 0xd95   :  { %v4822_v60 = vpop.eup %3634  ;;  %v1973_v47 = vsel %vm39_vm0, %v4820_v51, 0.0 }
 0xd96   :  { %v4826_v41 = vpop.eup %3636  ;;  %v1970_v50 = vsel %vm39_vm0, %v4822_v60, 0.0 }
 0xd97   :  { %v1976_v19 = vsel %vm39_vm0, %v4826_v41, 0.0 }
 0xdab   :  { %1968 = vadd.xlane.f32.xlu1 %v1967_v30 }
 0xdaf   :  { %1974 = vadd.xlane.f32.xlu1 %v1973_v47 }
 0xdb2   :  { %1971 = vadd.xlane.f32.xlu0 %v1970_v50 }
 0xdb3   :  { %1977 = vadd.xlane.f32.xlu1 %v1976_v19 }
 0xdf2   :  { %v1936_v23 = vpop.xlane.xlu0 %1935 }
 0xdf3   :  { %v1933_v18 = vpop.xlane.xlu1 %1932 }
 0xdf4   :  { %3638 = vrcp.f32 %v1933_v18 }
 0xdf5   :  { %3640 = vrcp.f32 %v1936_v23 }
 0xdf6   :  { %v1942_v33 = vpop.xlane.xlu0 %1941 }
 0xdf7   :  { %v1939_v53 = vpop.xlane.xlu1 %1938 }
 0xdf8   :  { %3642 = vrcp.f32 %v1939_v53 }
 0xdf9   :  { %3644 = vrcp.f32 %v1942_v33 }
 0xdfa   :  { %v1948_v58 = vpop.xlane.xlu0 %1947 }
 0xdfb   :  { %v1945_v10 = vpop.xlane.xlu1 %1944 }
 0xdfc   :  { %3646 = vrcp.f32 %v1945_v10 }
 0xdfd   :  { %3648 = vrcp.f32 %v1948_v58 }
 0xdfe   :  { %v3639_v48 = vpop.eup %3638  ;;  %v1954_v45 = vpop.xlane.xlu0 %1953 }
 0xdff   :  { %v1951_v26 = vpop.xlane.xlu1 %1950  ;;  %v1980_v13 = vmul.f32 %v3639_v48, %v4758_v54  ;;  %v3641_v48 = vpop.eup %3640 }
 0xe00   :  { %3650 = vrcp.f32 %v1951_v26  ;;  %v1982_v23 = vmul.f32 %v3641_v48, %v4756_v2 }
 0xe01   :  { %3253 = vmatprep.mubr.msk.f32.mxu1 %vm39_vm0, %v1980_v13  ;;  %3652 = vrcp.f32 %v1954_v45 }
 0xe02   :  { %v1960_v32 = vpop.xlane.xlu0 %1959  ;;  %v3643_v13 = vpop.eup %3642 }
 0xe03   :  { %v1957_v14 = vpop.xlane.xlu1 %1956  ;;  %v3645_v53 = vpop.eup %3644  ;;  %v1984_v33 = vmul.f32 %v3643_v13, %v4768_v39 }
 0xe04   :  { %3654 = vrcp.f32 %v1957_v14 }
 0xe05   :  { %3656 = vrcp.f32 %v1960_v32 }
 0xe06   :  { %v1966_v11 = vpop.xlane.xlu0 %1965 }
 0xe07   :  { %v3518_v25 = vpop.permute.xlu1 %3517 }
 0xe08   :  { %v3520_v30 = vunpack.i.h.bf16 %v3518_v25  ;;  %v3519_v47 = vunpack.i.l.bf16 %v3518_v25  ;;  %v3647_v25 = vpop.eup %3646 }
 0xe09   :  { %v1988_v58 = vmul.f32 %v3647_v25, %v4778_v29 }
 0xe0a   :  { %v3449_v50 = vpack.c.bf16 %v3520_v30, %v3519_v47  ;;  %v1963_v19 = vpop.xlane.xlu0 %1962 }
 0xe0b   :  { %3658 = vrcp.f32 %v1963_v19 }
 0xe0c   :  { %3450 = vmatprep.subr.bf16.mxu1 %v3449_v50  ;;  %3660 = vrcp.f32 %v1966_v11 }
 0xe0d   :  { %3452 = vmatpush3.bf16.msra.mxu1 %v3449_v50 }
 0xe0e   :  { %v3523_v18 = vpop.permute.xlu0 %3522 }
 0xe0f   :  { %v3525_v15 = vunpack.i.h.bf16 %v3523_v18  ;;  %v3524_v1 = vunpack.i.l.bf16 %v3523_v18 }
 0xe11   :  { %v3453_v54 = vpack.c.bf16 %v3525_v15, %v3524_v1  ;;  %v1986_v1 = vmul.f32 %v3645_v53, %v4766_v6  ;;  %v3649_v15 = vpop.eup %3648  ;;  %v1463_v53 = vld [vmem:[%s4993_s3 + $0x118] sm:$0xff] }
 0xe12   :  { %v3651_v10 = vpop.eup %3650  ;;  %v1990_v2 = vmul.f32 %v3649_v15, %v4776_v22 }
 0xe13   :  { %3454 = vmatprep.subr.bf16.mxu1 %v3453_v54  ;;  %v3653_v39 = vpop.eup %3652  ;;  %v1992_v45 = vmul.f32 %v3651_v10, %v4786_v38 }
 0xe14   :  { %3456 = vmatpush3.bf16.msra.mxu1 %v3453_v54  ;;  %v3655_v26 = vpop.eup %3654  ;;  %v1994_v6 = vmul.f32 %v3653_v39, %v4784_v62 }
 0xe15   :  { %v3657_v32 = vpop.eup %3656  ;;  %v1996_v29 = vmul.f32 %v3655_v26, %v4794_v49 }
 0xe16   :  { %v3659_v14 = vpop.eup %3658  ;;  %v1998_v22 = vmul.f32 %v3657_v32, %v4792_v63 }
 0xe17   :  { %3254 = vmatmul.mubr.msk.f32.vlgmr.msra.gmra.mrb[24].mxu1 %vm39_vm0, %v1982_v23  ;;  %v3661_v11 = vpop.eup %3660  ;;  %v2000_v38 = vmul.f32 %v3659_v14, %v4804_v52  ;;  %v1461_v23 = vld [vmem:[%s4993_s3 + $0x108] sm:$0xff] }
 0xe18   :  { %3256 = vmatprep.mubr.msk.f32.mxu1 %vm39_vm0, %v1984_v33  ;;  %v2002_v30 = vmul.f32 %v3661_v11, %v4800_v9 }
 0xe1b   :  { %3257 = vmatmul.mubr.msk.f32.gmra.mrb[26].mxu1 %vm39_vm0, %v1986_v1 }
 0xe1c   :  { %3259 = vmatprep.mubr.msk.f32.mxu1 %vm39_vm0, %v1988_v58 }
 0xe1f   :  { %3260 = vmatmul.mubr.msk.f32.gmra.mrb[28].mxu1 %vm39_vm0, %v1990_v2 }
 0xe20   :  { %3262 = vmatprep.mubr.msk.f32.mxu1 %vm39_vm0, %v1992_v45 }
 0xe23   :  { %3263 = vmatmul.mubr.msk.f32.gmra.mrb[30].mxu1 %vm39_vm0, %v1994_v6 }
 0xe24   :  { %3265 = vmatprep.mubr.msk.f32.mxu1 %vm39_vm0, %v1996_v29 }
 0xe27   :  { %3266 = vmatmul.mubr.msk.f32.gmra.mrb[32].mxu1 %vm39_vm0, %v1998_v22 }
 0xe28   :  { %3268 = vmatprep.mubr.msk.f32.mxu1 %vm39_vm0, %v2000_v38 }
 0xe2b   :  { %3269 = vmatmul.mubr.msk.f32.gmra.mrb[34].mxu1 %vm39_vm0, %v2002_v30 }
 0xe38   :  { %v1969_v62 = vpop.xlane.xlu1 %1968 }
 0xe39   :  { %3662 = vrcp.f32 %v1969_v62 }
 0xe3c   :  { %v1975_v49 = vpop.xlane.xlu1 %1974 }
 0xe3d   :  { %3664 = vrcp.f32 %v1975_v49 }
 0xe3f   :  { %v1972_v47 = vpop.xlane.xlu0 %1971 }
 0xe40   :  { %3666 = vrcp.f32 %v1972_v47  ;;  %v1978_v50 = vpop.xlane.xlu1 %1977 }
 0xe41   :  { %3668 = vrcp.f32 %v1978_v50 }
 0xe43   :  { %v3663_v63 = vpop.eup %3662 }
 0xe44   :  { %v2004_v19 = vmul.f32 %v3663_v63, %v4816_v43  ;;  %v1460_v43 = vld [vmem:[%s4993_s3 + $0x100] sm:$0xff] }
 0xe46   :  { %3271 = vmatprep.mubr.msk.f32.mxu1 %vm39_vm0, %v2004_v19 }
 0xe47   :  { %v3665_v52 = vpop.eup %3664 }
 0xe48   :  { %v2008_v48 = vmul.f32 %v3665_v52, %v4820_v51  ;;  %v1462_v51 = vld [vmem:[%s4993_s3 + $0x110] sm:$0xff] }
 0xe4a   :  { %v3667_v18 = vpop.eup %3666 }
 0xe4b   :  { %v2006_v54 = vmul.f32 %v3667_v18, %v4822_v60  ;;  %v3669_v9 = vpop.eup %3668  ;;  %v3457_v60 = vpack.c.bf16 %v1461_v23, %v1460_v43 }
 0xe4c   :  { %v2010_v13 = vmul.f32 %v3669_v9, %v4826_v41  ;;  %v3463_v41 = vpack.c.bf16 %v1463_v53, %v1462_v51 }
 0xe4d   :  { %3272 = vmatmul.mubr.msk.f32.gmra.mrb[36].mxu1 %vm39_vm0, %v2006_v54  ;;  %3459 = vmatprep.subr.msk.bf16.mxu0 %vm3800_vm1, %v3457_v60 }
 0xe4e   :  { %3274 = vmatprep.mubr.msk.f32.mxu1 %vm39_vm0, %v2008_v48  ;;  %3462 = vmatpush3.bf16.xpose.msk.msra.mxu0 %vm3800_vm1, %v3457_v60 }
 0xe4f   :  { %3465 = vmatprep.subr.msk.bf16.mxu0 %vm3800_vm1, %v3463_v41 }
 0xe51   :  { %3275 = vmatmul.mubr.msk.f32.gmra.mrb[38].mxu1 %vm39_vm0, %v2010_v13 }
 0xe56   :  { %3468 = vmatpush3.bf16.xpose.msk.msra.mxu0 %vm3800_vm1, %v3463_v41 }
 0xeea   :  { %v3255_v33 = vpop.f32.mrb[24].mxu1 }
 0xeeb   :  { %v2137_v25 = vpop.f32.mrb[25].mxu1  ;;  %v2217_v10 = vmul.f32 %v4530_v21, %v3255_v33 }
 0xeec   :  { %v2216_v45 = vmul.f32 %v4509_v0, %v2137_v25 }
 0xeee   :  { %v3258_v1 = vpop.f32.mrb[26].mxu1 }
 0xeef   :  { %v2147_v15 = vpop.f32.mrb[27].mxu1  ;;  %v2219_v14 = vmul.f32 %v4545_v17, %v3258_v1 }
 0xef0   :  { %v2218_v38 = vmul.f32 %v4537_v34, %v2147_v15 }
 0xef2   :  { %v3261_v58 = vpop.f32.mrb[28].mxu1 }
 0xef3   :  { %v2221_v2 = vmul.f32 %v4559_v37, %v3261_v58  ;;  %v2157_v39 = vpop.f32.mrb[29].mxu1 }
 0xef4   :  { %v2220_v26 = vmul.f32 %v4551_v36, %v2157_v39  ;;  %v1465_v39 = vld [vmem:[%s4993_s3 + $0x128] sm:$0xff] }
 0xef5   :  { %v2233_v6 = vadd.f32 %v2221_v2, %v2217_v10 }
 0xef6   :  { %v2232_v32 = vadd.f32 %v2220_v26, %v2216_v45  ;;  %v3264_v29 = vpop.f32.mrb[30].mxu1 }
 0xef7   :  { %v2223_v22 = vmul.f32 %v4574_v46, %v3264_v29  ;;  %v2167_v11 = vpop.f32.mrb[31].mxu1 }
 0xef8   :  { %v2222_v30 = vmul.f32 %v4566_v8, %v2167_v11 }
 0xef9   :  { %v2235_v21 = vadd.f32 %v2223_v22, %v2219_v14 }
 0xefa   :  { %v2234_v62 = vadd.f32 %v2222_v30, %v2218_v38  ;;  %v3267_v37 = vpop.f32.mrb[32].mxu1 }
 0xefb   :  { %v2225_v49 = vmul.f32 %v4588_v3, %v3267_v37  ;;  %v2177_v0 = vpop.f32.mrb[33].mxu1 }
 0xefc   :  { %v2224_v36 = vmul.f32 %v4580_v7, %v2177_v0 }
 0xefd   :  { %v2237_v47 = vadd.f32 %v2233_v6, %v2225_v49 }
 0xefe   :  { %v2236_v50 = vadd.f32 %v2232_v32, %v2224_v36  ;;  %v3270_v63 = vpop.f32.mrb[34].mxu1 }
 0xeff   :  { %v2227_v17 = vmul.f32 %v4603_v55, %v3270_v63  ;;  %v2187_v19 = vpop.f32.mrb[35].mxu1 }
 0xf00   :  { %v2226_v46 = vmul.f32 %v4595_v12, %v2187_v19 }
 0xf01   :  { %v2239_v52 = vadd.f32 %v2235_v21, %v2227_v17 }
 0xf02   :  { %v2238_v34 = vadd.f32 %v2234_v62, %v2226_v46 }
 0xf20   :  { %v3273_v18 = vpop.f32.mrb[36].mxu1 }
 0xf21   :  { %v2229_v8 = vmul.f32 %v4617_v16, %v3273_v18  ;;  %v2197_v54 = vpop.f32.mrb[37].mxu1 }
 0xf22   :  { %v2228_v9 = vmul.f32 %v4609_v5, %v2197_v54  ;;  %v2247_v5 = vrot.slane %v4496_v57, %v979_v24 }
 0xf23   :  { %v2241_v3 = vadd.f32 %v2237_v47, %v2229_v8 }
 0xf24   :  { %v2240_v48 = vadd.f32 %v2236_v50, %v2228_v9  ;;  %v3276_v13 = vpop.f32.mrb[38].mxu1 }
 0xf25   :  { %v2231_v7 = vmul.f32 %v4632_v59, %v3276_v13  ;;  %v2207_v43 = vpop.f32.mrb[39].mxu1  ;;  %v2416_v13 = vrot.slane %v4496_v57, %v1149_v56 }
 0xf26   :  { %v2230_v23 = vmul.f32 %v4624_v27, %v2207_v43  ;;  %3285 = vmatprep.mubr.msk.f32.mxu0 %vm39_vm0, %v2240_v48 }
 0xf27   :  { %v2243_v55 = vadd.f32 %v2239_v52, %v2231_v7  ;;  %3286 = vmatmul.mubr.msk.f32.vlgmr.msra.gmra.mrb[48].mxu0 %vm39_vm0, %v2241_v3 }
 0xf28   :  { %v2242_v12 = vadd.f32 %v2238_v34, %v2230_v23 }
 0xf2a   :  { %3288 = vmatprep.mubr.msk.f32.mxu0 %vm39_vm0, %v2242_v12  ;;  %v2424_v12 = vrot.slane %v4496_v57, %v1157_v61  ;;  %v1466_v61 = vld [vmem:[%s4993_s3 + $0x130] sm:$0xff] }
 0xf2b   :  { %3289 = vmatmul.mubr.msk.f32.gmra.mrb[50].mxu0 %vm39_vm0, %v2243_v55 }
 0xffa   :  { %v3287_v16 = vpop.f32.mrb[48].mxu0 }
 0xffb   :  { %v2344_v51 = vadd.f32 %v3287_v16, %v2247_v5  ;;  %v2338_v59 = vpop.f32.mrb[49].mxu0 }
 0xffc   :  { %v2339_v60 = vadd.f32 %v2338_v59, %v2247_v5 }
 0xffd   :  { %v2358_v27 = vadd.f32 %v2344_v51, %v4479_v31 }
 0xffe   :  { %v3290_v53 = vpop.f32.mrb[50].mxu0  ;;  %v2357_v41 = vadd.f32 %v2339_v60, %v4477_v20  ;;  %v1464_v20 = vld [vmem:[%s4993_s3 + $0x120] sm:$0xff] }
 0xfff   :  { %v2354_v33 = vadd.f32 %v3290_v53, %v2247_v5  ;;  %v2348_v25 = vpop.f32.mrb[51].mxu0  ;;  %v2364_v1 = vsel %vm39_vm0, %v2358_v27, 0.0  ;;  %v3469_v45 = vpack.c.bf16 %v1465_v39, %v1464_v20 }
0x1000   :  { %v2349_v15 = vadd.f32 %v2348_v25, %v2247_v5  ;;  %2365 = vadd.xlane.f32.xlu0 %v2364_v1  ;;  %v2361_v58 = vsel %vm39_vm0, %v2357_v41, 0.0 }
0x1001   :  { %2362 = vadd.xlane.f32.xlu1 %v2361_v58  ;;  %v2360_v24 = vadd.f32 %v2354_v33, %v4487_v35  ;;  %3479 = vmatprep.subr.msk.bf16.mxu1 %vm3800_vm1, %v3469_v45 }
0x1002   :  { %v2359_v10 = vadd.f32 %v2349_v15, %v4485_v28  ;;  %3471 = vmatprep.subr.msk.bf16.mxu0 %vm3800_vm1, %v3469_v45  ;;  %3480 = vmatpush3.bf16.xpose.msk.msra.mxu1 %vm3800_vm1, %v3469_v45  ;;  %v1467_v15 = vld [vmem:[%s4993_s3 + $0x138] sm:$0xff] }
0x1003   :  { %v2370_v2 = vsel %vm39_vm0, %v2360_v24, 0.0  ;;  %3474 = vmatpush3.bf16.xpose.msk.msra.mxu0 %vm3800_vm1, %v3469_v45  ;;  %v3475_v58 = vpack.c.bf16 %v1467_v15, %v1466_v61 }
0x1004   :  { %2371 = vadd.xlane.f32.xlu0 %v2370_v2  ;;  %v2367_v31 = vsel %vm39_vm0, %v2359_v10, 0.0 }
0x1005   :  { %2368 = vadd.xlane.f32.xlu1 %v2367_v31  ;;  %3476 = vmatprep.subr.bf16.mxu0 %v3475_v58 }
0x108d   :  { %v2366_v28 = vpop.xlane.xlu0 %2365 }
0x108e   :  { %v2374_v35 = vmul.f32 0.03125, %v2366_v28  ;;  %v2363_v26 = vpop.xlane.xlu1 %2362 }
0x108f   :  { %v2373_v6 = vmul.f32 0.03125, %v2363_v26 }
0x1090   :  { %v2378_v32 = vsub.f32 %v2358_v27, %v2374_v35 }
0x1091   :  { %v2377_v29 = vsub.f32 %v2357_v41, %v2373_v6  ;;  %v2372_v14 = vpop.xlane.xlu0 %2371 }
0x1092   :  { %v2376_v22 = vmul.f32 0.03125, %v2372_v14  ;;  %v2369_v11 = vpop.xlane.xlu1 %2368  ;;  %v2382_v38 = vmul.f32 %v2378_v32, %v2378_v32 }
0x1093   :  { %v2375_v30 = vmul.f32 0.03125, %v2369_v11  ;;  %v2381_v21 = vmul.f32 %v2377_v29, %v2377_v29 }
0x1094   :  { %v2380_v62 = vsub.f32 %v2360_v24, %v2376_v22  ;;  %v2388_v37 = vsel %vm39_vm0, %v2382_v38, 0.0  ;;  %v2432_v24 = vrot.slane %v4496_v57, %v1165_v44  ;;  %v2543_v44 = vrot.slane %v4496_v57, %v1276_v40 }
0x1095   :  { %v2379_v49 = vsub.f32 %v2359_v10, %v2375_v30  ;;  %2389 = vadd.xlane.f32.xlu0 %v2388_v37  ;;  %v2385_v4 = vsel %vm39_vm0, %v2381_v21, 0.0 }
0x1096   :  { %2386 = vadd.xlane.f32.xlu1 %v2385_v4  ;;  %v2384_v0 = vmul.f32 %v2380_v62, %v2380_v62 }
0x1097   :  { %v2383_v36 = vmul.f32 %v2379_v49, %v2379_v49 }
0x1098   :  { %v2394_v47 = vsel %vm39_vm0, %v2384_v0, 0.0 }
0x1099   :  { %2395 = vadd.xlane.f32.xlu0 %v2394_v47  ;;  %v2391_v50 = vsel %vm39_vm0, %v2383_v36, 0.0 }
0x109a   :  { %2392 = vadd.xlane.f32.xlu1 %v2391_v50 }
0x1122   :  { %v2390_v63 = vpop.xlane.xlu0 %2389 }
0x1123   :  { %v2398_v17 = vmul.f32 0.03125, %v2390_v63  ;;  %v2387_v19 = vpop.xlane.xlu1 %2386 }
0x1124   :  { %v2397_v46 = vmul.f32 0.03125, %v2387_v19 }
0x1125   :  { %v2402_v52 = vadd.f32 1e-05, %v2398_v17 }
0x1126   :  { %v2401_v34 = vadd.f32 1e-05, %v2397_v46  ;;  %v2396_v18 = vpop.xlane.xlu0 %2395 }
0x1127   :  { %3670 = vrsqrt.f32 %v2402_v52  ;;  %v2400_v8 = vmul.f32 0.03125, %v2396_v18  ;;  %v2393_v54 = vpop.xlane.xlu1 %2392 }
0x1128   :  { %3672 = vrsqrt.f32 %v2401_v34  ;;  %v2399_v9 = vmul.f32 0.03125, %v2393_v54 }
0x1129   :  { %v2404_v3 = vadd.f32 1e-05, %v2400_v8 }
0x112a   :  { %v2403_v48 = vadd.f32 1e-05, %v2399_v9 }
0x112b   :  { %3674 = vrsqrt.f32 %v2404_v3 }
0x112c   :  { %3676 = vrsqrt.f32 %v2403_v48 }
0x1131   :  { %v3671_v7 = vpop.eup %3670 }
0x1132   :  { %v3673_v43 = vpop.eup %3672  ;;  %v2410_v23 = vmul.f32 %v3671_v7, %v2378_v32 }
0x1133   :  { %v2409_v55 = vmul.f32 %v3673_v43, %v2377_v29 }
0x1134   :  { %v2418_v5 = vmul.f32 %v2416_v13, %v2410_v23 }
0x1135   :  { %v3675_v16 = vpop.eup %3674  ;;  %v2417_v51 = vmul.f32 %v2416_v13, %v2409_v55 }
0x1136   :  { %v3677_v59 = vpop.eup %3676  ;;  %v2412_v60 = vmul.f32 %v3675_v16, %v2380_v62  ;;  %v2426_v33 = vadd.f32 %v2424_v12, %v2418_v5 }
0x1137   :  { %v2425_v27 = vadd.f32 %v2424_v12, %v2417_v51  ;;  %v2411_v53 = vmul.f32 %v3677_v59, %v2379_v49 }
0x1138   :  { %v2420_v41 = vmul.f32 %v2416_v13, %v2412_v60 }
0x1139   :  { %3295 = vmatprep.mubr.msk.f32.mxu0 %vm39_vm0, %v2425_v27  ;;  %v2419_v56 = vmul.f32 %v2416_v13, %v2411_v53 }
0x113a   :  { %3296 = vmatmul.mubr.msk.f32.vlgmr.msra.gmra.mrb[52].mxu0 %vm39_vm0, %v2426_v33  ;;  %v2428_v1 = vadd.f32 %v2424_v12, %v2420_v41 }
0x113b   :  { %v2427_v25 = vadd.f32 %v2424_v12, %v2419_v56  ;;  %3478 = vmatpush3.bf16.msra.mxu0 %v3475_v58  ;;  %v3719_v58 = vld [vmem:[%s4994_s4 + $0x8] sm:$0xff]  ;;  %s3746_s4 = smov [#allocation2]  }
0x113c   :  { %s2722_s26 = sshll.u32 %s3746_s4, 4  ;;  %s2723_s26 = int_to_ptr.vmem [resolvable:$true] %s2722_s26 }
0x113d   :  { %3298 = vmatprep.mubr.msk.f32.mxu1 %vm39_vm0, %v2427_v25  ;;  %s3720_s13 = scalar_lea.vmem %s2723_s26, 512  ;;  %p3725_p1 = scmp.lt.s32.totalorder %s2723_s26, %s2723_s26 }
0x113e   :  { %3299 = vmatmul.mubr.msk.f32.vlgmr.msra.gmra.mrb[40].mxu1 %vm39_vm0, %v2428_v1  ;;  %p3721_p0 = scmp.ne.s32.totalorder %s2723_s26, %s3720_s13  ;;  %p3726_p2 = scmp.lt.s32.totalorder %s3720_s13, %s3720_s13 }
0x1140   :  { %p3727_p3 = por %p3726_p2, %p3725_p1 }
0x1142   :  { %p3728_p4 = pnand %p3727_p3, %p3721_p0 }
0x120d   :  { %v3297_v10 = vpop.f32.mrb[52].mxu0 }
0x120e   :  { %v2523_v2 = vadd.f32 %v3297_v10, %v2432_v24  ;;  %v2517_v31 = vpop.f32.mrb[53].mxu0 }
0x120f   :  { %v2518_v20 = vadd.f32 %v2517_v31, %v2432_v24 }
0x1210   :  { %v2537_v28 = vmax.f32 %v2523_v2, 0.0 }
0x1211   :  { %v2536_v39 = vmax.f32 %v2518_v20, 0.0  ;;  %v3300_v45 = vpop.f32.mrb[40].mxu1  ;;  %v5003_v20 = vsub.s32 7, %v3919_v42 }
0x1212   :  { %v2533_v35 = vadd.f32 %v3300_v45, %v2432_v24  ;;  %v2527_v26 = vpop.f32.mrb[41].mxu1 }
0x1213   :  { %v2528_v6 = vadd.f32 %v2527_v26, %v2432_v24  ;;  %3305 = vmatprep.mubr.msk.f32.mxu0 %vm1278_vm2, %v2536_v39  ;;  %v5002_v24 = vsub.s32 6, %v3919_v42  ;;  %v2708_v39 = vrot.slane %v3719_v58, %v5003_v20 }
0x1214   :  { %3306 = vmatmul.mubr.msk.f32.vlgmr.msra.gmra.mrb[54].mxu0 %vm1278_vm2, %v2537_v28  ;;  %v2539_v29 = vmax.f32 %v2533_v35, 0.0 }
0x1215   :  { %v2538_v32 = vmax.f32 %v2528_v6, 0.0  ;;  %v2700_v10 = vrot.slane %v3719_v58, %v5002_v24 }
0x1217   :  { %3308 = vmatprep.mubr.msk.f32.mxu0 %vm1278_vm2, %v2538_v32 }
0x1218   :  { %3309 = vmatmul.mubr.msk.f32.gmra.mrb[56].mxu0 %vm1278_vm2, %v2539_v29 }
0x12e7   :  { %v3307_v14 = vpop.f32.mrb[54].mxu0 }
0x12e8   :  { %v2628_v22 = vadd.f32 %v3307_v14, %v2543_v44  ;;  %v2622_v11 = vpop.f32.mrb[55].mxu0 }
0x12e9   :  { %v2623_v38 = vadd.f32 %v2622_v11, %v2543_v44 }
0x12ea   :  { %v2642_v30 = vadd.f32 %v2628_v22, %v2426_v33 }
0x12eb   :  { %v2641_v21 = vadd.f32 %v2623_v38, %v2425_v27  ;;  %v3310_v62 = vpop.f32.mrb[56].mxu0 }
0x12ec   :  { %v2638_v37 = vadd.f32 %v3310_v62, %v2543_v44  ;;  %v2632_v49 = vpop.f32.mrb[57].mxu0  ;;  %v2648_v4 = vsel %vm39_vm0, %v2642_v30, 0.0 }
0x12ed   :  { %v2633_v0 = vadd.f32 %v2632_v49, %v2543_v44  ;;  %2649 = vadd.xlane.f32.xlu0 %v2648_v4  ;;  %v2645_v36 = vsel %vm39_vm0, %v2641_v21, 0.0 }
0x12ee   :  { %2646 = vadd.xlane.f32.xlu1 %v2645_v36  ;;  %v2644_v47 = vadd.f32 %v2638_v37, %v2428_v1 }
0x12ef   :  { %v2643_v50 = vadd.f32 %v2633_v0, %v2427_v25 }
0x12f0   :  { %v2654_v40 = vsel %vm39_vm0, %v2644_v47, 0.0 }
0x12f1   :  { %2655 = vadd.xlane.f32.xlu0 %v2654_v40  ;;  %v2651_v57 = vsel %vm39_vm0, %v2643_v50, 0.0 }
0x12f2   :  { %2652 = vadd.xlane.f32.xlu1 %v2651_v57 }
0x137a   :  { %v2650_v63 = vpop.xlane.xlu0 %2649 }
0x137b   :  { %v2658_v17 = vmul.f32 0.03125, %v2650_v63  ;;  %v2647_v19 = vpop.xlane.xlu1 %2646 }
0x137c   :  { %v2657_v46 = vmul.f32 0.03125, %v2647_v19 }
0x137d   :  { %v2662_v52 = vsub.f32 %v2642_v30, %v2658_v17 }
0x137e   :  { %v2661_v34 = vsub.f32 %v2641_v21, %v2657_v46  ;;  %v2656_v18 = vpop.xlane.xlu0 %2655 }
0x137f   :  { %v2660_v8 = vmul.f32 0.03125, %v2656_v18  ;;  %v2653_v54 = vpop.xlane.xlu1 %2652  ;;  %v2666_v9 = vmul.f32 %v2662_v52, %v2662_v52 }
0x1380   :  { %v2659_v3 = vmul.f32 0.03125, %v2653_v54  ;;  %v2665_v48 = vmul.f32 %v2661_v34, %v2661_v34 }
0x1381   :  { %v2664_v13 = vsub.f32 %v2644_v47, %v2660_v8  ;;  %v2672_v7 = vsel %vm39_vm0, %v2666_v9, 0.0 }
0x1382   :  { %v2663_v43 = vsub.f32 %v2643_v50, %v2659_v3  ;;  %2673 = vadd.xlane.f32.xlu0 %v2672_v7  ;;  %v2669_v23 = vsel %vm39_vm0, %v2665_v48, 0.0 }
0x1383   :  { %2670 = vadd.xlane.f32.xlu1 %v2669_v23  ;;  %v2668_v55 = vmul.f32 %v2664_v13, %v2664_v13 }
0x1384   :  { %v2667_v12 = vmul.f32 %v2663_v43, %v2663_v43 }
0x1385   :  { %v2678_v5 = vsel %vm39_vm0, %v2668_v55, 0.0 }
0x1386   :  { %2679 = vadd.xlane.f32.xlu0 %v2678_v5  ;;  %v2675_v16 = vsel %vm39_vm0, %v2667_v12, 0.0 }
0x1387   :  { %2676 = vadd.xlane.f32.xlu1 %v2675_v16 }
0x140f   :  { %v2674_v51 = vpop.xlane.xlu0 %2673 }
0x1410   :  { %v2682_v59 = vmul.f32 0.03125, %v2674_v51  ;;  %v2671_v60 = vpop.xlane.xlu1 %2670 }
0x1411   :  { %v2681_v27 = vmul.f32 0.03125, %v2671_v60 }
0x1412   :  { %v2686_v53 = vadd.f32 1e-05, %v2682_v59 }
0x1413   :  { %v2685_v41 = vadd.f32 1e-05, %v2681_v27  ;;  %v2680_v33 = vpop.xlane.xlu0 %2679 }
0x1414   :  { %3678 = vrsqrt.f32 %v2686_v53  ;;  %v2684_v56 = vmul.f32 0.03125, %v2680_v33  ;;  %v2677_v25 = vpop.xlane.xlu1 %2676 }
0x1415   :  { %3680 = vrsqrt.f32 %v2685_v41  ;;  %v2683_v1 = vmul.f32 0.03125, %v2677_v25 }
0x1416   :  { %v2688_v61 = vadd.f32 1e-05, %v2684_v56 }
0x1417   :  { %v2687_v15 = vadd.f32 1e-05, %v2683_v1 }
0x1418   :  { %3682 = vrsqrt.f32 %v2688_v61 }
0x1419   :  { %3684 = vrsqrt.f32 %v2687_v15 }
0x141e   :  { %v3679_v2 = vpop.eup %3678 }
0x141f   :  { %v3681_v31 = vpop.eup %3680  ;;  %v2694_v45 = vmul.f32 %v3679_v2, %v2662_v52 }
0x1420   :  { %v2693_v28 = vmul.f32 %v3681_v31, %v2661_v34 }
0x1421   :  { %v2702_v35 = vmul.f32 %v2700_v10, %v2694_v45 }
0x1422   :  { %v3683_v26 = vpop.eup %3682  ;;  %v2701_v6 = vmul.f32 %v2700_v10, %v2693_v28 }
0x1423   :  { %v3685_v32 = vpop.eup %3684  ;;  %v2710_v29 = vadd.f32 %v2708_v39, %v2702_v35  ;;  %v2696_v44 = vmul.f32 %v3683_v26, %v2664_v13 }
0x1424   :  { %v2709_v14 = vadd.f32 %v2708_v39, %v2701_v6  ;;  %v2695_v22 = vmul.f32 %v3685_v32, %v2663_v43 }
0x1425   :  { %2714 = vst.msk [vmem:[#allocation2 + $0x8] sm:$0xff] %vm39_vm0, %v2710_v29  ;;  %v2704_v11 = vmul.f32 %v2700_v10, %v2696_v44 }
0x1426   :  { %2713 = vst.msk [vmem:[#allocation2] sm:$0xff] %vm39_vm0, %v2709_v14  ;;  %v2703_v38 = vmul.f32 %v2700_v10, %v2695_v22 }
0x1427   :  { %v2712_v42 = vadd.f32 %v2708_v39, %v2704_v11 }
0x1428   :  { %v2711_v30 = vadd.f32 %v2708_v39, %v2703_v38 }
0x1429   :  { %2716 = vst.msk [vmem:[#allocation2 + $0x18] sm:$0xff] %vm39_vm0, %v2712_v42 }
0x142a   :  { %2715 = vst.msk [vmem:[#allocation2 + $0x10] sm:$0xff] %vm39_vm0, %v2711_v30 }
0x142b   :  { %3731 = shalt.err (!%p3728_p4)
}
0x142c   :  { %s3732_s16 = scalar_lea.hbm %s4997_s7, 512 }
0x142d   :  { %p3733_p5 = scmp.ne.s32.totalorder %s4997_s7, %s3732_s16  ;;  %p3736_p6 = scmp.lt.u32.totalorder %s3732_s16, %s4997_s7 }
0x142f   :  { %p3738_p7 = pnand %p3736_p6, %p3733_p5 }
0x1431   :  { %3741 = shalt.err (!%p3738_p7)
}
0x1432   :  { %s3747_s5 = smov 128   ;;  %s3748_s21 = smov 8  }
0x1433   :  { %2728 = dma.vmem_to_hbm [thread:$0]  %s2723_s26, 512, %s4997_s7, [#allocation3], %s3747_s5, %s3747_s5, %s3748_s21  }
0x1434   :  { %3742 = dma.done.wait [#allocation3], 512  }
0x1435   :  { %3743 = vsyncadd [#allocation3], 4294966784 }
0x1436   :  { %2732 = vsyncpa [#allocation3], 1 }

</bundles_post_ra>
